<compile_context>
chip_gen: v7x
topology: tpu7x:2x2x1
jax: 0.10.0
libtpu: 0.0.40
codegen_flags: <defaults>
</compile_context>

<pallas_src>
import numpy as np
import jax
import jax.numpy as jnp
from jax import lax
from jax.experimental import pallas as pl
from jax.experimental.pallas import tpu as pltpu

V_TH = 0.25  # spike threshold


# ------------------------------ helpers ------------------------------------ #

def _round_up(x, m):
    return ((x + m - 1) // m) * m


def _pick_images_per_tile(n_imgs, hp, target_rows=512):
    """Whole-image row tiles: largest k | n_imgs with k*hp <= target, grid >= 4 (>=2)."""
    cands = [k for k in range(1, n_imgs + 1)
             if n_imgs % k == 0 and k * hp <= target_rows]
    pref4 = [k for k in cands if n_imgs // k >= 4]
    if pref4:
        return max(pref4)
    pref2 = [k for k in cands if n_imgs // k >= 2]
    if pref2:
        return max(pref2)
    return 1


_MASK_CACHE = {}


def _masks(n_imgs, hp, wp, H, W, cout):
    """Tiny (rows,1) row-mask and (1, cout*wp) col-mask keeping the pad ring at 0.

    The pad-ring invariant (row h=0/h>=H+1 and lane w=0/w=W+1 stay exactly 0) is what
    lets the next conv treat this output directly as its zero-padded input.
    """
    key = (n_imgs, hp, wp, H, W, cout)
    if key not in _MASK_CACHE:
        r = np.zeros((hp, 1), np.float32)
        r[1:H + 1] = 1.0
        row = np.tile(r, (n_imgs, 1))
        c = np.zeros((cout, wp), np.float32)
        c[:, 1:W + 1] = 1.0
        _MASK_CACHE[key] = (jnp.asarray(row), jnp.asarray(c.reshape(1, cout * wp)))
    return _MASK_CACHE[key]


def _pack_banded(w_oihw_f32, wp):
    """(Cout, Cin, 3, 3) -> (3, Cin*wp, Cout*wp) bf16 banded weights.

    M_kh[ci*wp + wi, co*wp + wo] = W[co, ci, kh, kw] iff wi == wo + kw - 1, i.e. the 3
    kw taps are folded into a band so one matmul per kernel-row kh does the whole row.
    """
    w = np.asarray(w_oihw_f32, np.float32)
    cout, cin = int(w.shape[0]), int(w.shape[1])
    mats = []
    for kh in range(3):
        m = np.zeros((cin * wp, cout * wp), np.float32)
        for kw in range(3):
            m += np.kron(w[:, :, kh, kw].T, np.eye(wp, k=1 - kw, dtype=np.float32))
        mats.append(m)
    return jnp.asarray(np.stack(mats, axis=0), dtype=jnp.bfloat16)


# ----------------------------- Pallas kernel ------------------------------- #

def _build_step_kernel(nb, apply_node):
    """Fused spiking step: per-branch 3x3 conv (+bias, >=V_TH), sum, node spike, mask."""

    def kernel(*refs):
        x_refs = refs[:nb]              # (tm, Cin_b*wp) bf16 row tiles (whole images)
        w_refs = refs[nb:2 * nb]        # (3, Cin_b*wp, Cout*wp) bf16 banded weights
        b_ref = refs[2 * nb]            # (nb, Cout*wp) f32 biases
        rm_ref = refs[2 * nb + 1]       # (tm, 1)  f32 row mask
        cm_ref = refs[2 * nb + 2]       # (1, Nout) f32 col mask
        o_ref = refs[2 * nb + 3]        # (tm, Cout*wp) bf16 output tile

        node = None
        for b in range(nb):
            xb = x_refs[b][...]                       # bf16 (tm, kin)
            tm, kin = xb.shape
            x32 = xb.astype(jnp.float32)
            z = jnp.zeros((1, kin), jnp.float32)
            # row r of x_prev holds x[r-1]; of x_next holds x[r+1].  Tiles cover whole
            # images, so the rows "lost" at tile edges only feed masked pad-row outputs.
            x_prev = jnp.concatenate([z, x32[:tm - 1, :]], axis=0).astype(jnp.bfloat16)
            x_next = jnp.concatenate([x32[1:, :], z], axis=0).astype(jnp.bfloat16)

            acc = jnp.dot(x_prev, w_refs[b][0], preferred_element_type=jnp.float32)
            acc = acc + jnp.dot(xb, w_refs[b][1], preferred_element_type=jnp.float32)
            acc = acc + jnp.dot(x_next, w_refs[b][2], preferred_element_type=jnp.float32)

            sp = (acc + b_ref[b:b + 1, :] >= V_TH).astype(jnp.float32)
            node = sp if node is None else node + sp
        if apply_node:
            node = (node >= V_TH).astype(jnp.float32)
        # keep the pad ring / round-up rows exactly 0 (padded-layout invariant)
        o_ref[...] = (node * rm_ref[...] * cm_ref[...]).astype(o_ref.dtype)

    return kernel


def spiking_step(xs, ws, bs, geom, apply_node):
    """Fused spiking conv step on the packed layout.

    xs: list of (n_rows, Cin_b*wp) bf16 packed activations (pad ring is zero)
    ws: list of (3, Cin_b*wp, Cout*wp) bf16 banded weights
    bs: list of (Cout*wp,) f32 packed biases
    geom: (n_imgs, hp, wp, H, W) with n_rows == n_imgs*hp
    Returns (n_rows, Cout*wp) bf16 packed spike map.
    """
    n_imgs, hp, wp, H, W = geom
    n_rows = n_imgs * hp
    nb = len(xs)
    kins = [int(x.shape[1]) for x in xs]
    nout = int(ws[0].shape[-1])
    assert all(int(w.shape[-1]) == nout for w in ws)
    assert all(int(x.shape[0]) == n_rows for x in xs)
    cout = nout // wp

    k_img = _pick_images_per_tile(n_imgs, hp)
    tm = k_img * hp                       # whole images per tile (multiple of 8)
    grid = n_rows // tm
    assert n_rows % tm == 0 and tm % 8 == 0
    assert grid >= 2, "need >=2 parallel grid steps (increase T*B)"

    b_stack = jnp.stack([jnp.asarray(b, jnp.float32) for b in bs], axis=0)  # (nb, nout)
    row_mask, col_mask = _masks(n_imgs, hp, wp, H, W, cout)

    flops = int(2 * n_rows * 3 * sum(k * nout for k in kins))
    bytes_accessed = int(2 * (n_rows * sum(kins) + 3 * sum(kins) * nout + n_rows * nout)
                         + 4 * (nb * nout + n_rows + nout))

    in_specs = (
        [pl.BlockSpec((tm, kins[b]), lambda i: (i, 0)) for b in range(nb)]
        + [pl.BlockSpec((3, kins[b], nout), lambda i: (0, 0, 0)) for b in range(nb)]
        + [pl.BlockSpec((nb, nout), lambda i: (0, 0)),
           pl.BlockSpec((tm, 1), lambda i: (i, 0)),
           pl.BlockSpec((1, nout), lambda i: (0, 0))])

    kernel = _build_step_kernel(nb, apply_node)
    out = pl.pallas_call(
        kernel,
        out_shape=jax.ShapeDtypeStruct((n_rows, nout), jnp.bfloat16),
        grid_spec=pltpu.PrefetchScalarGridSpec(
            num_scalar_prefetch=0,
            grid=(grid,),
            in_specs=in_specs,
            out_specs=pl.BlockSpec((tm, nout), lambda i: (i, 0)),
        ),
        compiler_params=pltpu.CompilerParams(
            dimension_semantics=("parallel",),
            vmem_limit_bytes=32 * 1024 * 1024),
        cost_estimate=pl.CostEstimate(flops=flops, transcendentals=0,
                                      bytes_accessed=bytes_accessed),
    )(*xs, *ws, b_stack, row_mask, col_mask)
    return out


# ------------------------------ layout glue --------------------------------- #

def _to_packed(x_tbchw, hp, wp):
    T, B, C, H, W = x_tbchw.shape
    n = T * B
    x = x_tbchw.reshape(n, C, H, W)
    x = jnp.pad(x, ((0, 0), (0, 0), (1, hp - H - 1), (1, 1)))   # bake pad ring once
    x = jnp.transpose(x, (0, 2, 1, 3))                           # (n, hp, C, wp)
    return x.reshape(n * hp, C * wp).astype(jnp.bfloat16)


def _from_packed(xp, T, B, H, W, hp, wp):
    n = T * B
    C = int(xp.shape[1]) // wp
    x = xp.reshape(n, hp, C, wp)[:, 1:H + 1, :, 1:W + 1]
    x = jnp.transpose(x, (0, 2, 1, 3)).astype(jnp.float32)       # (n, C, H, W)
    return x.reshape(T, B, C, H, W)


# ------------------------------- model forward ------------------------------ #

def cell_forward(prev_prev, prev, ops, cell_arch, steps, block_multiplier, geom):
    """Mirror of Cell.forward for downup_sample == 0 and matched spatial sizes."""
    states = [prev_prev, prev]
    selected = set(int(r[0]) for r in cell_arch)
    offset = 0
    ops_index = 0
    for _ in range(steps):
        xs, ws, bs = [], [], []
        for j, h in enumerate(states):
            if offset + j in selected:
                op = ops[ops_index]
                xs.append(h)
                ws.append(op["w"])
                bs.append(op["b_packed"])
                ops_index += 1
        # all branch convs + sum + node spike fused in one pallas_call
        s = spiking_step(xs, ws, bs, geom, apply_node=True)
        offset += len(states)
        states.append(s)
    # channel-major lane packing => channel concat is a plain lane concat
    concat_feature = jnp.concatenate(states[-block_multiplier:], axis=1)
    return prev, concat_feature


def new_feature_forward(x, params, cell_arch, steps, num_layers, block_multiplier):
    T, B, C, H, W = x.shape
    hp = _round_up(H + 2, 8)
    wp = W + 2
    geom = (T * B, hp, wp, H, W)
    x_packed = _to_packed(x, hp, wp)
    stem = spiking_step([x_packed], [params["stem"]["w"]], [params["stem"]["b_packed"]],
                        geom, apply_node=False)
    out = (stem, stem)
    for i in range(num_layers):
        out = cell_forward(out[0], out[1], params["cells"][i], cell_arch,
                           steps, block_multiplier, geom)
    last = _from_packed(out[1], T, B, H, W, hp, wp)
    return last, None  # eval mode: no auxiliary logits


# --------------------------- parameter building ----------------------------- #

def _make_op(key, cin, cout, wp):
    kw_, kb_ = jax.random.split(key)
    w = 0.1 * jax.random.normal(kw_, (cout, cin, 3, 3), jnp.float32)
    # round to bf16 once; both the kernel and the reference use these exact values
    w_np = np.asarray(jax.device_get(w.astype(jnp.bfloat16).astype(jnp.float32)))
    b_np = np.asarray(jax.device_get(0.05 * jax.random.normal(kb_, (cout,), jnp.float32)))
    return {
        "w_raw": jnp.asarray(w_np),                        # f32 (bf16-exact) for reference
        "b": jnp.asarray(b_np),
        "w": _pack_banded(w_np, wp),                       # (3, cin*wp, cout*wp) bf16
        "b_packed": jnp.asarray(np.repeat(b_np, wp).astype(np.float32)),  # (cout*wp,)
    }


def init_params(key, frame_rate, filter_multiplier, block_multiplier,
                num_layers, cell_arch, W):
    wp = W + 2
    stem_out = filter_multiplier * block_multiplier
    c_out = filter_multiplier
    c_prev = stem_out          # level stays 0 in the synthetic network_arch
    c_prev_prev = stem_out
    keys = jax.random.split(key, 1 + num_layers)
    params = {"stem": _make_op(keys[0], frame_rate, stem_out, wp), "cells": []}
    for i in range(num_layers):
        op_keys = jax.random.split(keys[1 + i], len(cell_arch))
        ops = []
        for oi, (branch, _prim) in enumerate(cell_arch):
            if int(branch) in (0, 2, 5):
                cin = c_prev_prev
            elif int(branch) in (1, 3, 6):
                cin = c_prev
            else:
                cin = c_out
            ops.append(_make_op(op_keys[oi], cin, c_out, wp))
        params["cells"].append(ops)
    return params


# ------------------------------ pure-JAX reference --------------------------- #

def _ref_spiking_conv(x_nhwc, w_oihw, b):
    w = jnp.transpose(w_oihw, (2, 3, 1, 0))   # HWIO
    y = lax.conv_general_dilated(
        x_nhwc, w, window_strides=(1, 1), padding="SAME",
        dimension_numbers=("NHWC", "HWIO", "NHWC"),
        precision=lax.Precision.HIGHEST)
    return ((y + b) >= V_TH).astype(jnp.float32)


def _ref_forward(x, params, cell_arch, steps, num_layers, block_multiplier):
    T, B, C, H, W = x.shape
    xh = jnp.transpose(x.reshape(T * B, C, H, W), (0, 2, 3, 1))
    stem = _ref_spiking_conv(xh, params["stem"]["w_raw"], params["stem"]["b"])
    s0 = s1 = stem
    selected = set(int(r[0]) for r in cell_arch)
    for i in range(num_layers):
        states = [s0, s1]
        offset = 0
        ops_index = 0
        for _ in range(steps):
            acc = None
            for j, h in enumerate(states):
                if offset + j in selected:
                    op = params["cells"][i][ops_index]
                    sp = _ref_spiking_conv(h, op["w_raw"], op["b"])
                    acc = sp if acc is None else acc + sp
                    ops_index += 1
            s = (acc >= V_TH).astype(jnp.float32)
            offset += len(states)
            states.append(s)
        concat = jnp.concatenate(states[-block_multiplier:], axis=-1)
        s0, s1 = s1, concat
    y = jnp.transpose(s1, (0, 3, 1, 2))
    return y.reshape(T, B, y.shape[1], H, W)


# --------------------------------- main ------------------------------------ #

if __name__ == "__main__":
    # args analog (small): fea_step=3, fea_num_layers=2, fea_block_multiplier=3,
    # fea_filter_multiplier=4
    steps = 3
    num_layers = 2
    block_multiplier = 3
    filter_multiplier = 4
    frame_rate = 3
    T, B, H, W = 2, 2, 16, 16

    # cell_arch: 2 selected branches per step (sorted, like torch.sort in Cell.__init__)
    cell_arch = np.array([[0, 1], [1, 1], [2, 1], [3, 1], [5, 1], [6, 1]], dtype=np.int64)

    # network_arch chosen so every layer sits at level 0 with downup_sample == 0
    network_arch = np.zeros((num_layers, 4, 3), dtype=np.int64)
    network_arch[:, 0, 1] = 1
    for i in range(num_layers):
        level = int(np.argmax(network_arch[i].sum(axis=1)))
        if i == 0:
            downup = -int(np.argmax(network_arch[0].sum(axis=1)))
        else:
            downup = int(np.argmax(network_arch[i].sum(axis=0))) - 1
        assert level == 0 and downup == 0, "synthetic config keeps resolution fixed"

    key = jax.random.PRNGKey(0)
    k_in, k_par = jax.random.split(key)
    # spiking (binary) input frames, [T, B, C, H, W]
    x = (jax.random.uniform(k_in, (T, B, frame_rate, H, W)) > 0.5).astype(jnp.float32)

    params = init_params(k_par, frame_rate, filter_multiplier, block_multiplier,
                         num_layers, cell_arch, W)

    fwd = jax.jit(lambda x_, p_: new_feature_forward(
        x_, p_, cell_arch, steps, num_layers, block_multiplier))
    last_output, logits_aux = fwd(x, params)
    jax.block_until_ready(last_output)

    expected_c = block_multiplier * filter_multiplier
    assert last_output.shape == (T, B, expected_c, H, W), last_output.shape
    assert logits_aux is None

    # cross-check against a pure-XLA reference of the same forward semantics
    ref = jax.jit(lambda x_, p_: _ref_forward(
        x_, p_, cell_arch, steps, num_layers, block_multiplier))(x, params)
    jax.block_until_ready(ref)
    mismatch = float(jnp.mean(jnp.abs(last_output - ref)))
    assert mismatch < 0.1, f"spike mismatch rate too high: {mismatch}"

    print("KERNEL_OK")
</pallas_src>

<mosaic_0001>
module attributes {stable_mosaic.version = 11 : i64} {
  func.func @kernel(%arg0: i32, %arg1: memref<24x54xbf16, #tpu.memory_space<vmem>>, %arg2: memref<3x54x216xbf16, #tpu.memory_space<vmem>>, %arg3: memref<1x216xf32, #tpu.memory_space<vmem>>, %arg4: memref<24x1xf32, #tpu.memory_space<vmem>>, %arg5: memref<1x216xf32, #tpu.memory_space<vmem>>, %arg6: memref<24x216xbf16, #tpu.memory_space<vmem>>) attributes {dimension_semantics = [#tpu.dimension_semantics<parallel>], iteration_bounds = array<i64: 4>, scalar_prefetch = 0 : i64, scratch_operands = 0 : i64, tpu.core_type = #tpu.core_type<tc>, window_params = [{transform_indices = @transform_0, window_bounds = array<i64: 24, 54>}, {pipeline_mode = #tpu.pipeline_mode<synchronous>, transform_indices = @transform_1, window_bounds = array<i64: 3, 54, 216>}, {pipeline_mode = #tpu.pipeline_mode<synchronous>, transform_indices = @transform_2, window_bounds = array<i64: 1, 216>}, {transform_indices = @transform_3, window_bounds = array<i64: 24, 1>}, {pipeline_mode = #tpu.pipeline_mode<synchronous>, transform_indices = @transform_4, window_bounds = array<i64: 1, 216>}, {transform_indices = @transform_5, window_bounds = array<i64: 24, 216>}]} {
    %c0 = arith.constant 0 : index
    %c0_0 = arith.constant 0 : index
    %0 = vector.load %arg1[%c0, %c0_0] : memref<24x54xbf16, #tpu.memory_space<vmem>>, vector<24x54xbf16>
    %1 = arith.extf %0 : vector<24x54xbf16> to vector<24x54xf32>
    %cst = arith.constant 0.000000e+00 : f32
    %2 = vector.broadcast %cst : f32 to vector<1x54xf32>
    %3 = vector.extract_strided_slice %1 {offsets = [0, 0], sizes = [23, 54], strides = [1, 1]} : vector<24x54xf32> to vector<23x54xf32>
    %4 = tpu.concatenate %2, %3 in 0 : vector<1x54xf32>, vector<23x54xf32> -> vector<24x54xf32>
    %5 = arith.truncf %4 : vector<24x54xf32> to vector<24x54xbf16>
    %6 = vector.extract_strided_slice %1 {offsets = [1, 0], sizes = [23, 54], strides = [1, 1]} : vector<24x54xf32> to vector<23x54xf32>
    %7 = tpu.concatenate %6, %2 in 0 : vector<23x54xf32>, vector<1x54xf32> -> vector<24x54xf32>
    %8 = arith.truncf %7 : vector<24x54xf32> to vector<24x54xbf16>
    %c0_1 = arith.constant 0 : index
    %c0_2 = arith.constant 0 : index
    %c0_3 = arith.constant 0 : index
    %9 = vector.load %arg2[%c0_1, %c0_2, %c0_3] : memref<3x54x216xbf16, #tpu.memory_space<vmem>>, vector<1x54x216xbf16>
    %10 = vector.shape_cast %9 : vector<1x54x216xbf16> to vector<54x216xbf16>
    %cst_4 = arith.constant dense<0.000000e+00> : vector<24x216xf32>
    %11 = tpu.matmul %5, %10, %cst_4 {dimension_numbers = #tpu.dot_dimension_numbers<[1], [0], [0], [1], [0, 0, 1, 1], [], []>} : vector<24x54xbf16>, vector<54x216xbf16>, vector<24x216xf32> -> vector<24x216xf32>
    %c1 = arith.constant 1 : index
    %c0_5 = arith.constant 0 : index
    %c0_6 = arith.constant 0 : index
    %12 = vector.load %arg2[%c1, %c0_5, %c0_6] : memref<3x54x216xbf16, #tpu.memory_space<vmem>>, vector<1x54x216xbf16>
    %13 = vector.shape_cast %12 : vector<1x54x216xbf16> to vector<54x216xbf16>
    %cst_7 = arith.constant dense<0.000000e+00> : vector<24x216xf32>
    %14 = tpu.matmul %0, %13, %cst_7 {dimension_numbers = #tpu.dot_dimension_numbers<[1], [0], [0], [1], [0, 0, 1, 1], [], []>} : vector<24x54xbf16>, vector<54x216xbf16>, vector<24x216xf32> -> vector<24x216xf32>
    %15 = arith.addf %11, %14 : vector<24x216xf32>
    %c2 = arith.constant 2 : index
    %c0_8 = arith.constant 0 : index
    %c0_9 = arith.constant 0 : index
    %16 = vector.load %arg2[%c2, %c0_8, %c0_9] : memref<3x54x216xbf16, #tpu.memory_space<vmem>>, vector<1x54x216xbf16>
    %17 = vector.shape_cast %16 : vector<1x54x216xbf16> to vector<54x216xbf16>
    %cst_10 = arith.constant dense<0.000000e+00> : vector<24x216xf32>
    %18 = tpu.matmul %8, %17, %cst_10 {dimension_numbers = #tpu.dot_dimension_numbers<[1], [0], [0], [1], [0, 0, 1, 1], [], []>} : vector<24x54xbf16>, vector<54x216xbf16>, vector<24x216xf32> -> vector<24x216xf32>
    %19 = arith.addf %15, %18 : vector<24x216xf32>
    %c0_11 = arith.constant 0 : index
    %c0_12 = arith.constant 0 : index
    %20 = vector.load %arg3[%c0_11, %c0_12] : memref<1x216xf32, #tpu.memory_space<vmem>>, vector<1x216xf32>
    %21 = vector.broadcast %20 : vector<1x216xf32> to vector<24x216xf32>
    %22 = arith.addf %19, %21 : vector<24x216xf32>
    %cst_13 = arith.constant 2.500000e-01 : f32
    %23 = vector.broadcast %cst_13 : f32 to vector<24x216xf32>
    %24 = arith.cmpf oge, %22, %23 : vector<24x216xf32>
    %25 = arith.extui %24 : vector<24x216xi1> to vector<24x216xi32>
    %26 = arith.sitofp %25 : vector<24x216xi32> to vector<24x216xf32>
    %c0_14 = arith.constant 0 : index
    %c0_15 = arith.constant 0 : index
    %27 = vector.load %arg4[%c0_14, %c0_15] : memref<24x1xf32, #tpu.memory_space<vmem>>, vector<24x1xf32>
    %28 = vector.broadcast %27 : vector<24x1xf32> to vector<24x216xf32>
    %29 = arith.mulf %26, %28 : vector<24x216xf32>
    %c0_16 = arith.constant 0 : index
    %c0_17 = arith.constant 0 : index
    %30 = vector.load %arg5[%c0_16, %c0_17] : memref<1x216xf32, #tpu.memory_space<vmem>>, vector<1x216xf32>
    %31 = vector.broadcast %30 : vector<1x216xf32> to vector<24x216xf32>
    %32 = arith.mulf %29, %31 : vector<24x216xf32>
    %33 = arith.truncf %32 : vector<24x216xf32> to vector<24x216xbf16>
    %c0_18 = arith.constant 0 : index
    %c0_19 = arith.constant 0 : index
    %34 = vector.load %arg6[%c0_18, %c0_19] : memref<24x216xbf16, #tpu.memory_space<vmem>>, vector<24x216xbf16>
    tpu.vector_store %arg6[%c0_18, %c0_19], %33 {strides = array<i32>} : memref<24x216xbf16, #tpu.memory_space<vmem>>, vector<24x216xbf16>,
    return
  }
  func.func @transform_0(%arg0: i32) -> (i32, i32) {
    %c0_i32 = arith.constant 0 : i32
    %c0_i32_0 = arith.constant 0 : i32
    return %arg0, %c0_i32 : i32, i32
  }
  func.func @transform_1(%arg0: i32) -> (i32, i32, i32) {
    %c0_i32 = arith.constant 0 : i32
    %c0_i32_0 = arith.constant 0 : i32
    %c0_i32_1 = arith.constant 0 : i32
    %c0_i32_2 = arith.constant 0 : i32
    return %c0_i32, %c0_i32_0, %c0_i32_1 : i32, i32, i32
  }
  func.func @transform_2(%arg0: i32) -> (i32, i32) {
    %c0_i32 = arith.constant 0 : i32
    %c0_i32_0 = arith.constant 0 : i32
    %c0_i32_1 = arith.constant 0 : i32
    return %c0_i32, %c0_i32_0 : i32, i32
  }
  func.func @transform_3(%arg0: i32) -> (i32, i32) {
    %c0_i32 = arith.constant 0 : i32
    %c0_i32_0 = arith.constant 0 : i32
    return %arg0, %c0_i32 : i32, i32
  }
  func.func @transform_4(%arg0: i32) -> (i32, i32) {
    %c0_i32 = arith.constant 0 : i32
    %c0_i32_0 = arith.constant 0 : i32
    %c0_i32_1 = arith.constant 0 : i32
    return %c0_i32, %c0_i32_0 : i32, i32
  }
  func.func @transform_5(%arg0: i32) -> (i32, i32) {
    %c0_i32 = arith.constant 0 : i32
    %c0_i32_0 = arith.constant 0 : i32
    return %arg0, %c0_i32 : i32, i32
  }
}

module attributes {stable_mosaic.version = 11 : i64} {
  func.func @kernel(%arg0: i32, %arg1: memref<24x216xbf16, #tpu.memory_space<vmem>>, %arg2: memref<24x216xbf16, #tpu.memory_space<vmem>>, %arg3: memref<3x216x72xbf16, #tpu.memory_space<vmem>>, %arg4: memref<3x216x72xbf16, #tpu.memory_space<vmem>>, %arg5: memref<2x72xf32, #tpu.memory_space<vmem>>, %arg6: memref<24x1xf32, #tpu.memory_space<vmem>>, %arg7: memref<1x72xf32, #tpu.memory_space<vmem>>, %arg8: memref<24x72xbf16, #tpu.memory_space<vmem>>) attributes {dimension_semantics = [#tpu.dimension_semantics<parallel>], iteration_bounds = array<i64: 4>, scalar_prefetch = 0 : i64, scratch_operands = 0 : i64, tpu.core_type = #tpu.core_type<tc>, window_params = [{transform_indices = @transform_0, window_bounds = array<i64: 24, 216>}, {transform_indices = @transform_1, window_bounds = array<i64: 24, 216>}, {pipeline_mode = #tpu.pipeline_mode<synchronous>, transform_indices = @transform_2, window_bounds = array<i64: 3, 216, 72>}, {pipeline_mode = #tpu.pipeline_mode<synchronous>, transform_indices = @transform_3, window_bounds = array<i64: 3, 216, 72>}, {pipeline_mode = #tpu.pipeline_mode<synchronous>, transform_indices = @transform_4, window_bounds = array<i64: 2, 72>}, {transform_indices = @transform_5, window_bounds = array<i64: 24, 1>}, {pipeline_mode = #tpu.pipeline_mode<synchronous>, transform_indices = @transform_6, window_bounds = array<i64: 1, 72>}, {transform_indices = @transform_7, window_bounds = array<i64: 24, 72>}]} {
    %c0 = arith.constant 0 : index
    %c0_0 = arith.constant 0 : index
    %0 = vector.load %arg1[%c0, %c0_0] : memref<24x216xbf16, #tpu.memory_space<vmem>>, vector<24x216xbf16>
    %1 = arith.extf %0 : vector<24x216xbf16> to vector<24x216xf32>
    %cst = arith.constant 0.000000e+00 : f32
    %2 = vector.broadcast %cst : f32 to vector<1x216xf32>
    %3 = vector.extract_strided_slice %1 {offsets = [0, 0], sizes = [23, 216], strides = [1, 1]} : vector<24x216xf32> to vector<23x216xf32>
    %4 = tpu.concatenate %2, %3 in 0 : vector<1x216xf32>, vector<23x216xf32> -> vector<24x216xf32>
    %5 = arith.truncf %4 : vector<24x216xf32> to vector<24x216xbf16>
    %6 = vector.extract_strided_slice %1 {offsets = [1, 0], sizes = [23, 216], strides = [1, 1]} : vector<24x216xf32> to vector<23x216xf32>
    %7 = tpu.concatenate %6, %2 in 0 : vector<23x216xf32>, vector<1x216xf32> -> vector<24x216xf32>
    %8 = arith.truncf %7 : vector<24x216xf32> to vector<24x216xbf16>
    %c0_1 = arith.constant 0 : index
    %c0_2 = arith.constant 0 : index
    %c0_3 = arith.constant 0 : index
    %9 = vector.load %arg3[%c0_1, %c0_2, %c0_3] : memref<3x216x72xbf16, #tpu.memory_space<vmem>>, vector<1x216x72xbf16>
    %10 = vector.shape_cast %9 : vector<1x216x72xbf16> to vector<216x72xbf16>
    %cst_4 = arith.constant dense<0.000000e+00> : vector<24x72xf32>
    %11 = tpu.matmul %5, %10, %cst_4 {dimension_numbers = #tpu.dot_dimension_numbers<[1], [0], [0], [1], [0, 0, 1, 1], [], []>} : vector<24x216xbf16>, vector<216x72xbf16>, vector<24x72xf32> -> vector<24x72xf32>
    %c1 = arith.constant 1 : index
    %c0_5 = arith.constant 0 : index
    %c0_6 = arith.constant 0 : index
    %12 = vector.load %arg3[%c1, %c0_5, %c0_6] : memref<3x216x72xbf16, #tpu.memory_space<vmem>>, vector<1x216x72xbf16>
    %13 = vector.shape_cast %12 : vector<1x216x72xbf16> to vector<216x72xbf16>
    %cst_7 = arith.constant dense<0.000000e+00> : vector<24x72xf32>
    %14 = tpu.matmul %0, %13, %cst_7 {dimension_numbers = #tpu.dot_dimension_numbers<[1], [0], [0], [1], [0, 0, 1, 1], [], []>} : vector<24x216xbf16>, vector<216x72xbf16>, vector<24x72xf32> -> vector<24x72xf32>
    %15 = arith.addf %11, %14 : vector<24x72xf32>
    %c2 = arith.constant 2 : index
    %c0_8 = arith.constant 0 : index
    %c0_9 = arith.constant 0 : index
    %16 = vector.load %arg3[%c2, %c0_8, %c0_9] : memref<3x216x72xbf16, #tpu.memory_space<vmem>>, vector<1x216x72xbf16>
    %17 = vector.shape_cast %16 : vector<1x216x72xbf16> to vector<216x72xbf16>
    %cst_10 = arith.constant dense<0.000000e+00> : vector<24x72xf32>
    %18 = tpu.matmul %8, %17, %cst_10 {dimension_numbers = #tpu.dot_dimension_numbers<[1], [0], [0], [1], [0, 0, 1, 1], [], []>} : vector<24x216xbf16>, vector<216x72xbf16>, vector<24x72xf32> -> vector<24x72xf32>
    %19 = arith.addf %15, %18 : vector<24x72xf32>
    %c0_11 = arith.constant 0 : index
    %c0_12 = arith.constant 0 : index
    %20 = vector.load %arg5[%c0_11, %c0_12] : memref<2x72xf32, #tpu.memory_space<vmem>>, vector<1x72xf32>
    %21 = vector.broadcast %20 : vector<1x72xf32> to vector<24x72xf32>
    %22 = arith.addf %19, %21 : vector<24x72xf32>
    %cst_13 = arith.constant 2.500000e-01 : f32
    %23 = vector.broadcast %cst_13 : f32 to vector<24x72xf32>
    %24 = arith.cmpf oge, %22, %23 : vector<24x72xf32>
    %25 = arith.extui %24 : vector<24x72xi1> to vector<24x72xi32>
    %26 = arith.sitofp %25 : vector<24x72xi32> to vector<24x72xf32>
    %c0_14 = arith.constant 0 : index
    %c0_15 = arith.constant 0 : index
    %27 = vector.load %arg2[%c0_14, %c0_15] : memref<24x216xbf16, #tpu.memory_space<vmem>>, vector<24x216xbf16>
    %28 = arith.extf %27 : vector<24x216xbf16> to vector<24x216xf32>
    %cst_16 = arith.constant 0.000000e+00 : f32
    %29 = vector.broadcast %cst_16 : f32 to vector<1x216xf32>
    %30 = vector.extract_strided_slice %28 {offsets = [0, 0], sizes = [23, 216], strides = [1, 1]} : vector<24x216xf32> to vector<23x216xf32>
    %31 = tpu.concatenate %29, %30 in 0 : vector<1x216xf32>, vector<23x216xf32> -> vector<24x216xf32>
    %32 = arith.truncf %31 : vector<24x216xf32> to vector<24x216xbf16>
    %33 = vector.extract_strided_slice %28 {offsets = [1, 0], sizes = [23, 216], strides = [1, 1]} : vector<24x216xf32> to vector<23x216xf32>
    %34 = tpu.concatenate %33, %29 in 0 : vector<23x216xf32>, vector<1x216xf32> -> vector<24x216xf32>
    %35 = arith.truncf %34 : vector<24x216xf32> to vector<24x216xbf16>
    %c0_17 = arith.constant 0 : index
    %c0_18 = arith.constant 0 : index
    %c0_19 = arith.constant 0 : index
    %36 = vector.load %arg4[%c0_17, %c0_18, %c0_19] : memref<3x216x72xbf16, #tpu.memory_space<vmem>>, vector<1x216x72xbf16>
    %37 = vector.shape_cast %36 : vector<1x216x72xbf16> to vector<216x72xbf16>
    %cst_20 = arith.constant dense<0.000000e+00> : vector<24x72xf32>
    %38 = tpu.matmul %32, %37, %cst_20 {dimension_numbers = #tpu.dot_dimension_numbers<[1], [0], [0], [1], [0, 0, 1, 1], [], []>} : vector<24x216xbf16>, vector<216x72xbf16>, vector<24x72xf32> -> vector<24x72xf32>
    %c1_21 = arith.constant 1 : index
    %c0_22 = arith.constant 0 : index
    %c0_23 = arith.constant 0 : index
    %39 = vector.load %arg4[%c1_21, %c0_22, %c0_23] : memref<3x216x72xbf16, #tpu.memory_space<vmem>>, vector<1x216x72xbf16>
    %40 = vector.shape_cast %39 : vector<1x216x72xbf16> to vector<216x72xbf16>
    %cst_24 = arith.constant dense<0.000000e+00> : vector<24x72xf32>
    %41 = tpu.matmul %27, %40, %cst_24 {dimension_numbers = #tpu.dot_dimension_numbers<[1], [0], [0], [1], [0, 0, 1, 1], [], []>} : vector<24x216xbf16>, vector<216x72xbf16>, vector<24x72xf32> -> vector<24x72xf32>
    %42 = arith.addf %38, %41 : vector<24x72xf32>
    %c2_25 = arith.constant 2 : index
    %c0_26 = arith.constant 0 : index
    %c0_27 = arith.constant 0 : index
    %43 = vector.load %arg4[%c2_25, %c0_26, %c0_27] : memref<3x216x72xbf16, #tpu.memory_space<vmem>>, vector<1x216x72xbf16>
    %44 = vector.shape_cast %43 : vector<1x216x72xbf16> to vector<216x72xbf16>
    %cst_28 = arith.constant dense<0.000000e+00> : vector<24x72xf32>
    %45 = tpu.matmul %35, %44, %cst_28 {dimension_numbers = #tpu.dot_dimension_numbers<[1], [0], [0], [1], [0, 0, 1, 1], [], []>} : vector<24x216xbf16>, vector<216x72xbf16>, vector<24x72xf32> -> vector<24x72xf32>
    %46 = arith.addf %42, %45 : vector<24x72xf32>
    %c1_29 = arith.constant 1 : index
    %c0_30 = arith.constant 0 : index
    %47 = vector.load %arg5[%c1_29, %c0_30] : memref<2x72xf32, #tpu.memory_space<vmem>>, vector<1x72xf32>
    %48 = vector.broadcast %47 : vector<1x72xf32> to vector<24x72xf32>
    %49 = arith.addf %46, %48 : vector<24x72xf32>
    %cst_31 = arith.constant 2.500000e-01 : f32
    %50 = vector.broadcast %cst_31 : f32 to vector<24x72xf32>
    %51 = arith.cmpf oge, %49, %50 : vector<24x72xf32>
    %52 = arith.extui %51 : vector<24x72xi1> to vector<24x72xi32>
    %53 = arith.sitofp %52 : vector<24x72xi32> to vector<24x72xf32>
    %54 = arith.addf %26, %53 : vector<24x72xf32>
    %cst_32 = arith.constant 2.500000e-01 : f32
    %55 = vector.broadcast %cst_32 : f32 to vector<24x72xf32>
    %56 = arith.cmpf oge, %54, %55 : vector<24x72xf32>
    %57 = arith.extui %56 : vector<24x72xi1> to vector<24x72xi32>
    %58 = arith.sitofp %57 : vector<24x72xi32> to vector<24x72xf32>
    %c0_33 = arith.constant 0 : index
    %c0_34 = arith.constant 0 : index
    %59 = vector.load %arg6[%c0_33, %c0_34] : memref<24x1xf32, #tpu.memory_space<vmem>>, vector<24x1xf32>
    %60 = vector.broadcast %59 : vector<24x1xf32> to vector<24x72xf32>
    %61 = arith.mulf %58, %60 : vector<24x72xf32>
    %c0_35 = arith.constant 0 : index
    %c0_36 = arith.constant 0 : index
    %62 = vector.load %arg7[%c0_35, %c0_36] : memref<1x72xf32, #tpu.memory_space<vmem>>, vector<1x72xf32>
    %63 = vector.broadcast %62 : vector<1x72xf32> to vector<24x72xf32>
    %64 = arith.mulf %61, %63 : vector<24x72xf32>
    %65 = arith.truncf %64 : vector<24x72xf32> to vector<24x72xbf16>
    %c0_37 = arith.constant 0 : index
    %c0_38 = arith.constant 0 : index
    %66 = vector.load %arg8[%c0_37, %c0_38] : memref<24x72xbf16, #tpu.memory_space<vmem>>, vector<24x72xbf16>
    tpu.vector_store %arg8[%c0_37, %c0_38], %65 {strides = array<i32>} : memref<24x72xbf16, #tpu.memory_space<vmem>>, vector<24x72xbf16>,
    return
  }
  func.func @transform_0(%arg0: i32) -> (i32, i32) {
    %c0_i32 = arith.constant 0 : i32
    %c0_i32_0 = arith.constant 0 : i32
    return %arg0, %c0_i32 : i32, i32
  }
  func.func @transform_1(%arg0: i32) -> (i32, i32) {
    %c0_i32 = arith.constant 0 : i32
    %c0_i32_0 = arith.constant 0 : i32
    return %arg0, %c0_i32 : i32, i32
  }
  func.func @transform_2(%arg0: i32) -> (i32, i32, i32) {
    %c0_i32 = arith.constant 0 : i32
    %c0_i32_0 = arith.constant 0 : i32
    %c0_i32_1 = arith.constant 0 : i32
    %c0_i32_2 = arith.constant 0 : i32
    return %c0_i32, %c0_i32_0, %c0_i32_1 : i32, i32, i32
  }
  func.func @transform_3(%arg0: i32) -> (i32, i32, i32) {
    %c0_i32 = arith.constant 0 : i32
    %c0_i32_0 = arith.constant 0 : i32
    %c0_i32_1 = arith.constant 0 : i32
    %c0_i32_2 = arith.constant 0 : i32
    return %c0_i32, %c0_i32_0, %c0_i32_1 : i32, i32, i32
  }
  func.func @transform_4(%arg0: i32) -> (i32, i32) {
    %c0_i32 = arith.constant 0 : i32
    %c0_i32_0 = arith.constant 0 : i32
    %c0_i32_1 = arith.constant 0 : i32
    return %c0_i32, %c0_i32_0 : i32, i32
  }
  func.func @transform_5(%arg0: i32) -> (i32, i32) {
    %c0_i32 = arith.constant 0 : i32
    %c0_i32_0 = arith.constant 0 : i32
    return %arg0, %c0_i32 : i32, i32
  }
  func.func @transform_6(%arg0: i32) -> (i32, i32) {
    %c0_i32 = arith.constant 0 : i32
    %c0_i32_0 = arith.constant 0 : i32
    %c0_i32_1 = arith.constant 0 : i32
    return %c0_i32, %c0_i32_0 : i32, i32
  }
  func.func @transform_7(%arg0: i32) -> (i32, i32) {
    %c0_i32 = arith.constant 0 : i32
    %c0_i32_0 = arith.constant 0 : i32
    return %arg0, %c0_i32 : i32, i32
  }
}

</mosaic_0001>

<bundles_post_ra>
// kernel: _lambda_.7
= control target key start
LH: loop header
LB: loop body
LE: loop exit
PB: predicated region body
PF: predicated region fallthrough
CT: control target
= control target key end

     0   :  { %s970_s18 = smov 0   ;;  %s1098_s0 = inlined_call_operand.vmem [shape: bf16[96,54], index: 0, kind: input, shape index: {}]   ;;  %s1099_s1 = inlined_call_operand.vmem [shape: bf16[3,54,216], index: 1, kind: input, shape index: {}]   ;;  %s1100_s2 = inlined_call_operand.vmem [shape: f32[1,216], index: 2, kind: input, shape index: {}]   ;;  %s1101_s3 = inlined_call_operand.vmem [shape: f32[96,1], index: 3, kind: input, shape index: {}]   ;;  %s1102_s4 = inlined_call_operand.vmem [shape: f32[1,216], index: 4, kind: input, shape index: {}]   ;;  %s1103_s5 = inlined_call_operand.vmem [shape: bf16[96,216], index: 5, kind: output, shape index: {}]  }
   0x1 LB: > { %s793_s19 = sadd.s32 4294967295, %s936_s18   ;;  %p797_p0 = scmp.ge.s32.totalorder %s936_s18, 1  ;;  %s936_s18 = sphi %s970_s18, %s15_s18  }
   0x2   : > { %p199_p1 = scmp.lt.s32.totalorder %s936_s18, 5 }
   0x4   : > { %p200_p2 = pnand %p797_p0, %p199_p1 }
   0x5   : > { %v894_v0 = vld [vmem:[%s1099_s1 + $0x3c] ss:$8 sps:$4 sm:$0xff] (!%p200_p2)   ;;  %v938_v2 = vmov (!%p200_p2), 0   ;;  %s233_s24 = smul.u32 (!%p200_p2), 3, %s793_s19  ;;  %v898_v3 = vld [vmem:[%s1099_s1 + $0x38] ss:$8 sps:$4 sm:$0xff] (!%p200_p2)   ;;  %v621_v60 = vlaneseq (!%p200_p2) }
   0x6   : > { %203 = sbr.rel (%p200_p2) target bundleno = 269 (0x10d), region = 40  ;;  %v896_v1 = vld [vmem:[%s1099_s1 + $0x4] ss:$8 sps:$4 sm:$0xff] (!%p200_p2)   ;;  %390 = vmatprep.mubr.bf16.mxu1 (!%p200_p2), %v938_v2  ;;  %488 = vmatprep.mubr.bf16.mxu0 (!%p200_p2), %v938_v2  ;;  %v899_v4 = vld [vmem:[%s1099_s1] ss:$8 sps:$4 sm:$0xff] (!%p200_p2)   ;;  %vm351_vm0 = vcmask (!%p200_p2), 1042432  }
   0x7   : > { %358 = vmatprep.subr.bf16.mxu1 (!%p200_p2), %v894_v0  ;;  %892 = vset.pattern.permute.xlu0 (!%p200_p2), %v938_v2  ;;  %v900_v5 = vld [vmem:[%s1099_s1 + $0x4c] ss:$8 sps:$4 sm:$0xff] (!%p200_p2)   ;;  %p234_p3 = scmp.lt.s32.totalorder (!%p200_p2), %s233_s24, 11  ;;  %v904_v7 = vld [vmem:[%s1099_s1 + $0x48] ss:$8 sps:$4 sm:$0xff] (!%p200_p2)   ;;  %vm262_vm1 = vcmask (!%p200_p2), 1040384  }
   0x8   : > { %456 = vmatprep.subr.bf16.mxu0 (!%p200_p2), %v896_v1  ;;  %893 = vset.pattern.permute.xlu1 (!%p200_p2), %v938_v2  ;;  %v902_v6 = vld [vmem:[%s1099_s1 + $0x14] ss:$8 sps:$4 sm:$0xff] (!%p200_p2)   ;;  %v905_v8 = vld [vmem:[%s1099_s1 + $0x10] ss:$8 sps:$4 sm:$0xff] (!%p200_p2)   ;;  %v908_v10 = vld [vmem:[%s1099_s1 + $0x24] ss:$8 sps:$4 sm:$0xff] (!%p200_p2)  }
   0x9   : > { %359 = vmatpush1.bf16.msra.mxu1 (!%p200_p2), %v898_v3  ;;  %457 = vmatpush1.bf16.msra.mxu0 (!%p200_p2), %v899_v4  ;;  %v906_v9 = vld [vmem:[%s1099_s1 + $0x5c] ss:$8 sps:$4 sm:$0xff] (!%p200_p2)   ;;  %v910_v11 = vld [vmem:[%s1099_s1 + $0x58] ss:$8 sps:$4 sm:$0xff] (!%p200_p2)   ;;  %v808_v13 = vld [vmem:[%s1099_s1 + $0x68] sm:$0x77] (!%p200_p2) }
   0xa   : > { %360 = vmatprep.subr.bf16.mxu1 (!%p200_p2), %v900_v5  ;;  %458 = vmatprep.subr.bf16.mxu0 (!%p200_p2), %v902_v6  ;;  %v911_v12 = vld [vmem:[%s1099_s1 + $0x20] ss:$8 sps:$4 sm:$0xff] (!%p200_p2)   ;;  %v292_v14 = vld [vmem:[%s1099_s1 + $0x30] sm:$0x77] (!%p200_p2)  ;;  %v818_v15 = vcombine.high (!%p200_p2), %v808_v13, %v808_v13  ;;  %v817_v17 = vcombine.low (!%p200_p2), %v808_v13, %v808_v13  ;;  %vm344_vm2 = vcmask (!%p200_p2), 441344   ;;  %vm274_vm3 = vcmask (!%p200_p2), 1046528  }
   0xb   : > { %v829_v16 = vcombine.high (!%p200_p2), %v292_v14, %v292_v14  ;;  %v828_v18 = vcombine.low (!%p200_p2), %v292_v14, %v292_v14  ;;  %v919_v27 = vld [vmem:[%s1099_s1 + $0x74] ss:$8 sps:$4 sm:$0xff] (!%p200_p2)   ;;  %v917_v34 = vld [vmem:[%s1099_s1 + $0x70] ss:$8 sps:$4 sm:$0xff] (!%p200_p2)   ;;  %v922_v36 = vld [vmem:[%s1099_s1 + $0x84] ss:$8 sps:$4 sm:$0xff] (!%p200_p2)  }
   0xc   : > { %v353_v23 = vsel (!%p200_p2), %vm351_vm0, %v817_v17, 0  ;;  %v920_v37 = vld [vmem:[%s1099_s1 + $0x80] ss:$8 sps:$4 sm:$0xff] (!%p200_p2)   ;;  %v926_v40 = vld [vmem:[%s1099_s1 + $0x94] ss:$8 sps:$4 sm:$0xff] (!%p200_p2)   ;;  %v622_v61 = vshrl.u32 (!%p200_p2), %v621_v60, 7 }
   0xd   : > { %s1105_s24 = smov (!%p234_p3, %s233_s24), 11  ;;  %361 = vmatpush1.bf16.msra.mxu1 %v904_v7  ;;  %459 = vmatpush1.bf16.msra.mxu0 %v905_v8  ;;  %v451_v24 = vsel %vm351_vm0, %v828_v18, 0  ;;  %v839_v41 = vld [vmem:[%s1099_s1 + $0xa0] sm:$0x77]  ;;  %v924_v47 = vld [vmem:[%s1099_s1 + $0x90] ss:$8 sps:$4 sm:$0xff]  }
   0xe   : > { %s798_s26 = sshll.u32 %s1105_s24, 2  ;;  %362 = vmatprep.subr.bf16.mxu1 %v906_v9  ;;  %460 = vmatprep.subr.bf16.mxu0 %v908_v10  ;;  %s799_s30 = sshll.u32 %s1105_s24, 3  ;;  %v847_v48 = vcombine.high %v839_v41, %v839_v41  ;;  %v846_v49 = vcombine.low %v839_v41, %v839_v41  ;;  %v623_v8 = vsub.s32 0, %v622_v61  ;;  %v619_v9 = vld [vmem:[%s1100_s2] sm:$0x3]  ;;  %v627_v10 = vsub.s32 1, %v622_v61 }
   0xf   : > { %s237_s29 = scalar_lea.vmem %s1098_s0, %s798_s26  ;;  %s1036_s8 = scalar_lea.vmem %s1101_s3, %s799_s30  ;;  %vm717_vm4 = vcmask 1043456   ;;  %vm718_vm5 = vcmask 719876  }
  0x10   : > { %v253_v19 = vld [vmem:[%s237_s29] sm:$0xff]   ;;  %v255_v22 = vld [vmem:[%s237_s29 + $0x8] sm:$0xf]  ;;  %v657_v30 = vld [vmem:[%s1036_s8 + $0x10] sm:$0xff]  ;;  %v557_v53 = vsel %vm351_vm0, %v846_v49, 0  ;;  %v628_v14 = vrot.slane %v619_v9, %v627_v10  ;;  %s250_s7 = scalar_lea.vmem %s1103_s5, %s799_s30 }
  0x11   : > { %v256_v20 = vunpack.c.l.bf16 %v253_v19  ;;  %v257_v21 = vunpack.c.h.bf16 %v253_v19  ;;  %363 = vmatpush1.bf16.msra.mxu1 %v910_v11  ;;  %461 = vmatpush1.bf16.msra.mxu0 %v911_v12  ;;  %v258_v28 = vunpack.c.l.bf16 %v255_v22  ;;  %v655_v29 = vld [vmem:[%s1036_s8] sm:$0xff]  ;;  %v656_v39 = vld [vmem:[%s1036_s8 + $0x8] sm:$0xff]  ;;  %v810_v42 = vcombine.low %v255_v22, %v255_v22  ;;  %vm719_vm12 = vmor %vm718_vm5, %vm717_vm4 }
  0x12   : > { %819 = vmatprep.subr.msk.bf16.mxu1 %vm351_vm0, %v818_v15  ;;  %830 = vmatprep.subr.msk.bf16.mxu0 %vm351_vm0, %v829_v16  ;;  %v624_v11 = vrot.slane %v619_v9, %v623_v8 }
  0x13   : > { %v264_v25 = vrot.slane %v257_v21, 7  ;;  %v263_v26 = vrot.slane %v256_v20, 7  ;;  %660 = vperm.xlu0 %892, %v655_v29   ;;  %670 = vperm.xlu1 %893, %v657_v30   ;;  %v266_v35 = vrot.slane %v258_v28, 7  ;;  %v275_v44 = vrot.slane %v256_v20, 1 }
  0x14   : > { %v276_v45 = vrot.slane %v257_v21, 1  ;;  %v278_v46 = vrot.slane %v258_v28, 1 }
  0x15   : > { %v265_v31 = vsel %vm262_vm1, %v263_v26, %v264_v25  ;;  %v271_v32 = vsel %vm262_vm1, 0.0, %v263_v26  ;;  %365 = vmatpush1.bf16.msra.mxu1 %v353_v23  ;;  %463 = vmatpush1.bf16.msra.mxu0 %v451_v24  ;;  %v267_v38 = vsel %vm262_vm1, %v264_v25, %v266_v35 }
  0x16   : > { %v272_v33 = vpack.c.bf16 %v265_v31, %v271_v32  ;;  %562 = vmatprep.subr.bf16.mxu0 %v919_v27  ;;  %866 = vmatprep.subr.bf16.mxu1 %v919_v27  ;;  %v273_v43 = vpack.c.bf16 %v267_v38, %v267_v38  ;;  %v277_v50 = vsel %vm274_vm3, %v275_v44, %v276_v45  ;;  %v283_v52 = vsel %vm274_vm3, %v278_v46, 0.0 }
  0x17   : > { %665 = vperm.xlu0 %892, %v656_v39   ;;  %v279_v51 = vsel %vm274_vm3, %v276_v45, %v278_v46  ;;  %v285_v55 = vpack.c.bf16 %v283_v52, %v283_v52 }
  0x18   : > { %820 = vmatmul.mubr.msk.bf16.vlgmr.msra.gmra.mrb[0].mxu1 %vm344_vm2, %v253_v19  ;;  %831 = vmatmul.mubr.msk.bf16.vlgmr.msra.gmra.mrb[0].mxu0 %vm344_vm2, %v272_v33  ;;  %v284_v54 = vpack.c.bf16 %v279_v51, %v277_v50  ;;  %v679_v19 = vld [vmem:[%s1102_s4] sm:$0x3] }
  0x19   : > { %563 = vmatpush1.bf16.msra.mxu0 %v917_v34  ;;  %870 = vmatpush1.bf16.msra.mxu1 %v917_v34  ;;  %v684_v31 = vrot.slane %v679_v19, %v623_v8  ;;  %v688_v34 = vrot.slane %v679_v19, %v627_v10 }
  0x1a   : > { %564 = vmatprep.subr.bf16.mxu0 %v922_v36  ;;  %867 = vmatprep.subr.bf16.mxu1 %v922_v36 }
  0x1b   : > { %400 = vmatprep.mubr.bf16.mxu1 %v938_v2  ;;  %498 = vmatprep.mubr.bf16.mxu0 %v938_v2 }
  0x1d   : > { %565 = vmatpush1.bf16.msra.mxu0 %v920_v37  ;;  %871 = vmatpush1.bf16.msra.mxu1 %v920_v37  ;;  %v939_v37 = vmov 0.0  }
  0x1e   : > { %566 = vmatprep.subr.bf16.mxu0 %v926_v40  ;;  %868 = vmatprep.subr.bf16.mxu1 %v926_v40 }
  0x20   : > { %821 = vmatmul.mubr.msk.bf16.gmra.mrb[4].mxu1 %vm344_vm2, %v810_v42  ;;  %832 = vmatmul.mubr.msk.bf16.gmra.mrb[4].mxu0 %vm344_vm2, %v273_v43 }
  0x21   : > { %567 = vmatpush1.bf16.msra.mxu0 %v924_v47  ;;  %872 = vmatpush1.bf16.msra.mxu1 %v924_v47 }
  0x22   : > { %848 = vmatprep.subr.msk.bf16.mxu0 %vm351_vm0, %v847_v48  ;;  %869 = vmatprep.subr.msk.bf16.mxu1 %vm351_vm0, %v847_v48 }
  0x23   : > { %594 = vmatprep.mubr.bf16.mxu0 %v938_v2  ;;  %604 = vmatprep.mubr.bf16.mxu1 %v938_v2 }
  0x25   : > { %569 = vmatpush1.bf16.msra.mxu0 %v557_v53  ;;  %873 = vmatpush1.bf16.msra.mxu1 %v557_v53 }
  0x28   : > { %849 = vmatmul.mubr.msk.bf16.vlgmr.msra.gmra.mrb[0].mxu0 %vm344_vm2, %v284_v54  ;;  %850 = vmatmul.mubr.msk.bf16.vlgmr.msra.gmra.mrb[8].mxu1 %vm344_vm2, %v285_v55 }
  0x92   : > { %v661_v32 = vpop.permute.xlu0 %660  ;;  %v671_v36 = vpop.permute.xlu1 %670 }
  0x96   : > { %v666_v52 = vpop.permute.xlu0 %665 }
  0xeb   : > { %v392_v56 = vpop.f32.mrb[0].mxu1 }
  0xec   : > { %v394_v57 = vpop.f32.mrb[1].mxu1 }
  0xed   : > { %v396_v58 = vpop.f32.mrb[2].mxu1 }
  0xee   : > { %v398_v59 = vpop.f32.mrb[3].mxu1 }
  0xf3   : > { %v402_v62 = vpop.f32.mrb[4].mxu1  ;;  %v500_v63 = vpop.f32.mrb[4].mxu0 }
  0xf4   : > { %v501_v0 = vadd.f32 %v500_v63, %v402_v62  ;;  %v404_v1 = vpop.f32.mrb[5].mxu1  ;;  %v502_v3 = vpop.f32.mrb[5].mxu0 }
  0xf5   : > { %v503_v2 = vadd.f32 %v502_v3, %v404_v1  ;;  %v406_v4 = vpop.f32.mrb[6].mxu1  ;;  %v504_v5 = vpop.f32.mrb[6].mxu0 }
  0xf6   : > { %v407_v6 = vpop.f32.mrb[7].mxu1  ;;  %v505_v7 = vpop.f32.mrb[7].mxu0 }
  0xfb   : > { %v596_v12 = vpop.f32.mrb[0].mxu0  ;;  %v606_v13 = vpop.f32.mrb[8].mxu1 }
  0xfc   : > { %v874_v15 = vadd.f32 %v596_v12, %v392_v56  ;;  %v617_v16 = vadd.f32 %v606_v13, %v501_v0  ;;  %v598_v17 = vpop.f32.mrb[1].mxu0  ;;  %v608_v18 = vpop.f32.mrb[9].mxu1 }
  0xfd   : > { %v875_v20 = vadd.f32 %v598_v17, %v394_v57  ;;  %v618_v21 = vadd.f32 %v608_v18, %v503_v2  ;;  %v600_v22 = vpop.f32.mrb[2].mxu0  ;;  %v610_v23 = vpop.f32.mrb[10].mxu1 }
  0xfe   : > { %v631_v24 = vadd.f32 %v874_v15, %v624_v11  ;;  %v635_v25 = vadd.f32 %v624_v11, %v617_v16  ;;  %v876_v26 = vadd.f32 %v600_v22, %v396_v58  ;;  %v602_v27 = vpop.f32.mrb[3].mxu0  ;;  %v611_v28 = vpop.f32.mrb[11].mxu1 }
  0xff   : > { %v632_v29 = vadd.f32 %v875_v20, %v628_v14  ;;  %v636_v30 = vadd.f32 %v628_v14, %v618_v21  ;;  %v877_v33 = vadd.f32 %v602_v27, %v398_v59 }
 0x100   : > { %vm637_vm6 = vcmp.ge.f32.partialorder %v631_v24, 0.25  ;;  %v633_v35 = vadd.f32 %v876_v26, %v624_v11  ;;  %vm641_vm7 = vcmp.ge.f32.partialorder %v635_v25, 0.25 }
 0x101   : > { %vm638_vm8 = vcmp.ge.f32.partialorder %v632_v29, 0.25  ;;  %v851_v38 = vsel %vm637_vm6, 1.0, %v939_v37  ;;  %v634_v39 = vadd.f32 %v877_v33, %v628_v14  ;;  %vm642_vm9 = vcmp.ge.f32.partialorder %v636_v30, 0.25 }
 0x102   : > { %v852_v40 = vsel %vm638_vm8, 1.0, %v939_v37  ;;  %v673_v41 = vmul.f32 %v851_v38, %v661_v32  ;;  %v855_v42 = vsel %vm641_vm7, 1.0, %v939_v37  ;;  %v856_v43 = vsel %vm642_vm9, 1.0, %v939_v37 }
 0x103   : > { %v674_v44 = vmul.f32 %v852_v40, %v661_v32  ;;  %v677_v45 = vmul.f32 %v855_v42, %v671_v36  ;;  %v678_v46 = vmul.f32 %v856_v43, %v671_v36  ;;  %vm639_vm10 = vcmp.ge.f32.partialorder %v633_v35, 0.25 }
 0x104   : > { %v691_v47 = vmul.f32 %v684_v31, %v673_v41  ;;  %vm640_vm11 = vcmp.ge.f32.partialorder %v634_v39, 0.25  ;;  %v853_v48 = vsel %vm639_vm10, 1.0, %v939_v37 }
 0x105   : > { %v692_v49 = vmul.f32 %v688_v34, %v674_v44  ;;  %v695_v50 = vmul.f32 %v684_v31, %v677_v45  ;;  %v696_v51 = vmul.f32 %v688_v34, %v678_v46  ;;  %v854_v53 = vsel %vm640_vm11, 1.0, %v939_v37 }
 0x106   : > { %v675_v54 = vmul.f32 %v853_v48, %v666_v52  ;;  %v676_v55 = vmul.f32 %v854_v53, %v666_v52 }
 0x107   : > { %v863_v56 = vpack.c.bf16 %v692_v49, %v691_v47  ;;  %v865_v57 = vpack.c.bf16 %v696_v51, %v695_v50 }
 0x108   : > { %v693_v58 = vmul.f32 %v684_v31, %v675_v54  ;;  %v694_v59 = vmul.f32 %v688_v34, %v676_v55 }
 0x109   : > { %720 = vst.msk [vmem:[%s250_s7] sm:$0xff] %vm719_vm12, %v863_v56  ;;  %722 = vst.msk [vmem:[%s250_s7 + $0x10] sm:$0xff] %vm719_vm12, %v865_v57 }
 0x10a   : > { %v864_v60 = vpack.c.bf16 %v694_v59, %v693_v58 }
 0x10c   : > { %721 = vst.msk [vmem:[%s250_s7 + $0x8] sm:$0xff] %vm719_vm12, %v864_v60 }
 0x10d PF: > { %s15_s18 = sadd.s32 1, %s936_s18  }
 0x10e   : > { %p12_p4 = scmp.ge.s32.totalorder %s15_s18, 6  }
 0x110   :  { %14 = sbr.rel (!%p12_p4) target bundleno = 1 (0x1), region = 75 }

// kernel: _lambda_.8
= control target key start
LH: loop header
LB: loop body
LE: loop exit
PB: predicated region body
PF: predicated region fallthrough
CT: control target
= control target key end

     0   :  { %s2074_s24 = smov 0   ;;  %s2633_s0 = inlined_call_operand.vmem [shape: bf16[96,216], index: 0, kind: input, shape index: {}, may-alias: {0,1}]   ;;  %s2634_s1 = inlined_call_operand.vmem [shape: bf16[96,216], index: 1, kind: input, shape index: {}, may-alias: {0,1}]   ;;  %s2635_s2 = inlined_call_operand.vmem [shape: bf16[3,216,72], index: 2, kind: input, shape index: {}]   ;;  %s2636_s3 = inlined_call_operand.vmem [shape: bf16[3,216,72], index: 3, kind: input, shape index: {}]   ;;  %s2637_s4 = inlined_call_operand.vmem [shape: f32[2,72], index: 4, kind: input, shape index: {}]   ;;  %s2638_s5 = inlined_call_operand.vmem [shape: f32[96,1], index: 5, kind: input, shape index: {}]   ;;  %s2639_s6 = inlined_call_operand.vmem [shape: f32[1,72], index: 6, kind: input, shape index: {}]   ;;  %s2640_s7 = inlined_call_operand.vmem [shape: bf16[96,72], index: 7, kind: output, shape index: {}]  }
   0x1 LB: > { %s1659_s25 = sadd.s32 4294967295, %s2029_s24   ;;  %p1663_p0 = scmp.ge.s32.totalorder %s2029_s24, 1  ;;  %s2029_s24 = sphi %s2074_s24, %s17_s24  }
   0x2   : > { %p262_p1 = scmp.lt.s32.totalorder %s2029_s24, 5 }
   0x4   : > { %p263_p2 = pnand %p1663_p0, %p262_p1 }
   0x5   : > { %v1931_v0 = vld [vmem:[%s2635_s2 + $0x6c] sm:$0xff] (!%p263_p2)   ;;  %v2031_v1 = vmov (!%p263_p2), 0   ;;  %v1932_v2 = vld [vmem:[%s2635_s2] sm:$0xff] (!%p263_p2)   ;;  %v1933_v3 = vld [vmem:[%s2635_s2 + $0x74] sm:$0xff] (!%p263_p2)   ;;  %s306_s15 = smul.u32 (!%p263_p2), 3, %s1659_s25  ;;  %vm545_vm0 = vcmask (!%p263_p2), 719872  }
   0x6   : > { %266 = sbr.rel (%p263_p2) target bundleno = 413 (0x19d), region = 48  ;;  %556 = vmatprep.subr.bf16.mxu0 (!%p263_p2), %v2031_v1  ;;  %694 = vmatprep.subr.bf16.mxu1 (!%p263_p2), %v2031_v1  ;;  %v1934_v4 = vld [vmem:[%s2635_s2 + $0x8] sm:$0xff] (!%p263_p2)   ;;  %v1935_v5 = vld [vmem:[%s2635_s2 + $0x7c] sm:$0xff] (!%p263_p2)   ;;  %v1936_v6 = vld [vmem:[%s2635_s2 + $0x10] sm:$0xff] (!%p263_p2)   ;;  %vm348_vm1 = vcmask (!%p263_p2), 1040384   ;;  %vm552_vm2 = vcmask (!%p263_p2), 1043456  }
   0x7   : > { %557 = vmatpush1.bf16.msra.mxu0 (!%p263_p2), %v1931_v0  ;;  %1929 = vset.pattern.permute.xlu0 (!%p263_p2), %v2031_v1  ;;  %v1937_v7 = vld [vmem:[%s2635_s2 + $0x84] sm:$0xff] (!%p263_p2)   ;;  %v1938_v8 = vld [vmem:[%s2635_s2 + $0x18] sm:$0xff] (!%p263_p2)   ;;  %p307_p3 = scmp.lt.s32.totalorder (!%p263_p2), %s306_s15, 11  ;;  %v1939_v9 = vld [vmem:[%s2635_s2 + $0x8c] sm:$0xff] (!%p263_p2)   ;;  %vm2032_vm4 = vmmov (!%p263_p2), 1   ;;  %vm371_vm6 = vcmask (!%p263_p2), 1046528  }
   0x8   : > { %695 = vmatpush1.bf16.msra.mxu1 (!%p263_p2), %v1932_v2  ;;  %558 = vmatprep.subr.bf16.mxu0 (!%p263_p2), %v2031_v1  ;;  %v1940_v10 = vld [vmem:[%s2635_s2 + $0x20] sm:$0xff] (!%p263_p2)   ;;  %v1941_v11 = vld [vmem:[%s2635_s2 + $0x94] sm:$0xff] (!%p263_p2)   ;;  %v1942_v12 = vld [vmem:[%s2635_s2 + $0x28] sm:$0xff] (!%p263_p2)  }
   0x9   : > { %696 = vmatprep.subr.bf16.mxu1 (!%p263_p2), %v2031_v1  ;;  %1930 = vset.pattern.permute.xlu1 (!%p263_p2), %v2031_v1  ;;  %v1943_v13 = vld [vmem:[%s2635_s2 + $0x9c] sm:$0xff] (!%p263_p2)   ;;  %v1944_v14 = vld [vmem:[%s2635_s2 + $0x30] sm:$0xff] (!%p263_p2)   ;;  %v1945_v15 = vld [vmem:[%s2635_s2 + $0xa4] sm:$0xff] (!%p263_p2)  }
   0xa   : > { %v1946_v16 = vld [vmem:[%s2635_s2 + $0x38] sm:$0xff] (!%p263_p2)   ;;  %v1947_v22 = vld [vmem:[%s2635_s2 + $0xac] sm:$0xff] (!%p263_p2)   ;;  %v1948_v23 = vld [vmem:[%s2635_s2 + $0x40] sm:$0xff] (!%p263_p2)  }
   0xb   : > { %559 = vmatpush1.bf16.msra.mxu0 (!%p263_p2), %v1933_v3  ;;  %v1949_v28 = vld [vmem:[%s2635_s2 + $0xb4] sm:$0xff] (!%p263_p2)   ;;  %v1950_v30 = vld [vmem:[%s2635_s2 + $0x48] sm:$0xff] (!%p263_p2)   ;;  %v1951_v31 = vld [vmem:[%s2635_s2 + $0xbc] sm:$0xff] (!%p263_p2)  }
   0xc   : > { %697 = vmatpush1.bf16.msra.mxu1 (!%p263_p2), %v1934_v4  ;;  %560 = vmatprep.subr.bf16.mxu0 (!%p263_p2), %v2031_v1  ;;  %v1952_v32 = vld [vmem:[%s2635_s2 + $0x50] sm:$0xff] (!%p263_p2)   ;;  %v1953_v33 = vld [vmem:[%s2635_s2 + $0xc4] sm:$0xff] (!%p263_p2)   ;;  %v1954_v34 = vld [vmem:[%s2635_s2 + $0x58] sm:$0xff] (!%p263_p2)  }
   0xd   : > { %698 = vmatprep.subr.bf16.mxu1 %v2031_v1  ;;  %s2646_s15 = smov (!%p307_p3, %s306_s15), 11  ;;  %v1955_v38 = vld [vmem:[%s2635_s2 + $0xcc] sm:$0xff]   ;;  %v1956_v39 = vld [vmem:[%s2635_s2 + $0x60] sm:$0xff]   ;;  %v1957_v40 = vld [vmem:[%s2635_s2 + $0xd4] ss:$0 sps:$4 sm:$0xff]  }
   0xe   : > { %s2135_s29 = sshll.u32 %s2646_s15, 3  ;;  %v1958_v44 = vld [vmem:[%s2635_s2 + $0x68] ss:$0 sps:$4 sm:$0xff]   ;;  %vm1732_vm3 = vmneg %vm348_vm1  ;;  %v554_v46 = vsel %vm552_vm2, %v1957_v40, 0  ;;  %v1961_v53 = vld [vmem:[%s2635_s2 + $0xd8] sm:$0xff]   ;;  %s1669_s27 = sshll.u32 %s2646_s15, 2 }
   0xf   : > { %561 = vmatpush1.bf16.msra.mxu0 %v1935_v5  ;;  %s2149_s13 = scalar_lea.vmem %s2633_s0, %s2135_s29  ;;  %v692_v49 = vsel %vm552_vm2, %v1958_v44, 0  ;;  %vm2242_vm5 = vmpackc.low %vm2032_vm4, %vm1732_vm3  ;;  %s2250_s26 = scalar_lea.vmem %s2634_s1, %s2135_s29  ;;  %v1962_v55 = vld [vmem:[%s2636_s3 + $0x6c] sm:$0xff]   ;;  %v1963_v0 = vld [vmem:[%s2635_s2 + $0xe0] sm:$0xff]  }
  0x10   : > { %699 = vmatpush1.bf16.msra.mxu1 %v1936_v6  ;;  %562 = vmatprep.subr.bf16.mxu0 %v2031_v1  ;;  %v2159_v17 = vld [vmem:[%s2149_s13] sm:$0xff]  ;;  %v2162_v18 = vld [vmem:[%s2149_s13 + $0x8] sm:$0xff]  ;;  %v2209_v35 = vld [vmem:[%s2149_s13 + $0x10] sm:$0xff]  ;;  %s2370_s13 = scalar_lea.vmem %s2638_s5, %s2135_s29  ;;  %s330_s30 = scalar_lea.vmem %s2640_s7, %s1669_s27 }
  0x11   : > { %700 = vmatprep.subr.bf16.mxu1 %v2031_v1  ;;  %v1698_v19 = vcombine.high %v2159_v17, %v2162_v18  ;;  %v337_v20 = vunpack.c.h.bf16 %v2159_v17  ;;  %v339_v21 = vunpack.c.h.bf16 %v2162_v18  ;;  %v336_v36 = vunpack.c.l.bf16 %v2159_v17  ;;  %v2272_v62 = vld [vmem:[%s2250_s26] sm:$0xff]  ;;  %v2275_v63 = vld [vmem:[%s2250_s26 + $0x8] sm:$0xff]  ;;  %v1964_v4 = vld [vmem:[%s2636_s3 + $0x74] sm:$0xff]  }
  0x12   : > { %v338_v37 = vunpack.c.l.bf16 %v2162_v18  ;;  %v341_v41 = vunpack.c.h.bf16 %v2209_v35  ;;  %v340_v48 = vunpack.c.l.bf16 %v2209_v35  ;;  %v1697_v50 = vcombine.low %v2159_v17, %v2162_v18  ;;  %v1989_v17 = vld [vmem:[%s2635_s2 + $0x140] ss:$0 sps:$4 sm:$0xff]   ;;  %v1990_v18 = vld [vmem:[%s2636_s3 + $0xd4] ss:$0 sps:$4 sm:$0xff]   ;;  %vm2483_vm7 = vmpackc.low %vm371_vm6, %vm371_vm6 }
  0x13   : > { %563 = vmatpush1.bf16.msra.mxu0 %v1937_v7  ;;  %1715 = vmatprep.mubr.msk.bf16.mxu0 %vm545_vm0, %v1698_v19  ;;  %v350_v24 = vrot.slane %v337_v20, 7  ;;  %v353_v25 = vrot.slane %v339_v21, 7  ;;  %v349_v43 = vrot.slane %v336_v36, 7  ;;  %v1700_v57 = vcombine.high %v2209_v35, %v2209_v35 }
  0x14   : > { %701 = vmatpush1.bf16.msra.mxu1 %v1938_v8  ;;  %564 = vmatprep.subr.bf16.mxu0 %v2031_v1  ;;  %v351_v42 = vrot.slane %v338_v37, 7  ;;  %v357_v45 = vrot.slane %v341_v41, 7  ;;  %v355_v56 = vrot.slane %v340_v48, 7  ;;  %v375_v58 = vrot.slane %v337_v20, 1  ;;  %v1967_v20 = vld [vmem:[%s2635_s2 + $0xf0] sm:$0xff]  }
  0x15   : > { %702 = vmatprep.subr.bf16.mxu1 %v2031_v1  ;;  %v354_v26 = vsel %vm348_vm1, %v350_v24, %v353_v25  ;;  %v366_v27 = vsel %vm348_vm1, 0.0, %v350_v24  ;;  %v376_v59 = vrot.slane %v339_v21, 1  ;;  %v2269_v61 = vrot.slane %v341_v41, 1  ;;  %v1531_v41 = vld [vmem:[%s2370_s13] sm:$0xff] }
  0x16   : > { %v368_v29 = vpack.c.bf16 %v354_v26, %v366_v27  ;;  %v352_v47 = vsel %vm348_vm1, %v349_v43, %v351_v42  ;;  %v358_v54 = vsel %vm348_vm1, %v353_v25, %v357_v45  ;;  %v931_v2 = vunpack.c.l.bf16 %v2272_v62  ;;  %v1969_v25 = vld [vmem:[%s2635_s2 + $0xf8] sm:$0xff]   ;;  %v1970_v26 = vld [vmem:[%s2636_s3 + $0x8c] sm:$0xff]   ;;  %v1971_v27 = vld [vmem:[%s2635_s2 + $0x100] sm:$0xff]   ;;  %1536 = vperm.xlu0 %1929, %v1531_v41  }
  0x17   : > { %565 = vmatpush1.bf16.msra.mxu0 %v1939_v9  ;;  %v1734_v52 = vpack.c.bf16 %v352_v47, %v349_v43  ;;  %v370_v60 = vpack.c.bf16 %v358_v54, %v358_v54  ;;  %v933_v3 = vunpack.c.l.bf16 %v2275_v63  ;;  %v356_v5 = vsel %vm348_vm1, %v351_v42, %v355_v56  ;;  %v1978_v42 = vld [vmem:[%s2636_s3 + $0xac] sm:$0xff]   ;;  %v1985_v54 = vld [vmem:[%s2636_s3 + $0xc4] sm:$0xff]  }
  0x18   : > { %703 = vmatpush1.bf16.msra.mxu1 %v1940_v10  ;;  %566 = vmatprep.subr.bf16.mxu0 %v2031_v1  ;;  %v2291_v6 = vrot.slane %v931_v2, 7  ;;  %v1699_v8 = vcombine.low %v2209_v35, %v2209_v35  ;;  %v377_v9 = vsel %vm371_vm6, %v375_v58, %v376_v59  ;;  %v381_v10 = vsel %vm371_vm6, %v376_v59, %v2269_v61  ;;  %v1532_v45 = vld [vmem:[%s2370_s13 + $0x8] sm:$0xff]  ;;  %v1987_v58 = vld [vmem:[%s2635_s2 + $0x138] sm:$0xff]   ;;  %v2004_v41 = vld [vmem:[%s2636_s3 + $0x100] sm:$0xff]  }
  0x19   : > { %704 = vmatprep.subr.bf16.mxu1 %v2031_v1  ;;  %1731 = vmatprep.mubr.msk.bf16.mxu1 %vm545_vm0, %v368_v29  ;;  %v2293_v7 = vrot.slane %v933_v3, 7  ;;  %v1815_v19 = vcombine.high %v2272_v62, %v2275_v63  ;;  %v965_v21 = vrot.slane %v931_v2, 1  ;;  %v1973_v29 = vld [vmem:[%s2635_s2 + $0x108] sm:$0xff]   ;;  %v373_v56 = vrot.slane %v338_v37, 1 }
  0x1a   : > { %1541 = vperm.xlu0 %1929, %v1532_v45   ;;  %v1988_v59 = vld [vmem:[%s2636_s3 + $0xcc] sm:$0xff]   ;;  %v858_v37 = vsel %vm552_vm2, %v1989_v17, 0  ;;  %v932_v2 = vunpack.c.h.bf16 %v2272_v62  ;;  %v2019_v17 = vld [vmem:[%s2636_s3 + $0x60] sm:$0xff]  }
  0x1b   : > { %567 = vmatpush1.bf16.msra.mxu0 %v1941_v11  ;;  %v1965_v11 = vld [vmem:[%s2635_s2 + $0xe8] sm:$0xff]  }
  0x1c   : > { %705 = vmatpush1.bf16.msra.mxu1 %v1942_v12  ;;  %568 = vmatprep.subr.bf16.mxu0 %v2031_v1  ;;  %v369_v12 = vpack.c.bf16 %v356_v5, %v356_v5  ;;  %v1993_v5 = vld [vmem:[%s2636_s3] sm:$0xff]   ;;  %v2006_v45 = vld [vmem:[%s2636_s3 + $0x108] sm:$0xff]  }
  0x1d   : > { %706 = vmatprep.subr.bf16.mxu1 %v2031_v1 }
  0x1f   : > { %569 = vmatpush1.bf16.msra.mxu0 %v1943_v13  ;;  %v2307_v13 = vsel %vm348_vm1, %v2291_v6, %v2293_v7 }
  0x20   : > { %707 = vmatpush1.bf16.msra.mxu1 %v1944_v14  ;;  %570 = vmatprep.subr.bf16.mxu0 %v2031_v1  ;;  %v1966_v14 = vld [vmem:[%s2636_s3 + $0x7c] sm:$0xff]  }
  0x21   : > { %708 = vmatprep.subr.bf16.mxu1 %v2031_v1 }
  0x23   : > { %571 = vmatpush1.bf16.msra.mxu0 %v1945_v15  ;;  %v1851_v15 = vpack.c.bf16 %v2307_v13, %v2291_v6 }
  0x24   : > { %709 = vmatpush1.bf16.msra.mxu1 %v1946_v16  ;;  %572 = vmatprep.subr.bf16.mxu0 %v2031_v1  ;;  %v391_v16 = vpack.c.bf16 %v381_v10, %v377_v9  ;;  %v1995_v10 = vld [vmem:[%s2636_s3 + $0x8] sm:$0xff]  }
  0x25   : > { %710 = vmatprep.subr.bf16.mxu1 %v2031_v1 }
  0x27   : > { %573 = vmatpush1.bf16.msra.mxu0 %v1947_v22  ;;  %v1968_v22 = vld [vmem:[%s2636_s3 + $0x84] sm:$0xff]  }
  0x28   : > { %711 = vmatpush1.bf16.msra.mxu1 %v1948_v23  ;;  %574 = vmatprep.subr.bf16.mxu0 %v2031_v1  ;;  %v966_v23 = vrot.slane %v933_v3, 1  ;;  %v934_v3 = vunpack.c.h.bf16 %v2275_v63 }
  0x29   : > { %712 = vmatprep.subr.bf16.mxu1 %v2031_v1 }
  0x2a   : > { %v2329_v24 = vsel %vm371_vm6, %v965_v21, %v966_v23  ;;  %v2462_v9 = vrot.slane %v934_v3, 7 }
  0x2b   : > { %575 = vmatpush1.bf16.msra.mxu0 %v1949_v28  ;;  %v1972_v28 = vld [vmem:[%s2636_s3 + $0x94] sm:$0xff]  }
  0x2c   : > { %713 = vmatpush1.bf16.msra.mxu1 %v1950_v30  ;;  %576 = vmatprep.subr.bf16.mxu0 %v2031_v1  ;;  %v1974_v30 = vld [vmem:[%s2636_s3 + $0x9c] sm:$0xff]  }
  0x2d   : > { %714 = vmatprep.subr.bf16.mxu1 %v2031_v1 }
  0x2f   : > { %577 = vmatpush1.bf16.msra.mxu0 %v1951_v31  ;;  %v1975_v31 = vld [vmem:[%s2635_s2 + $0x110] sm:$0xff]  }
  0x30   : > { %715 = vmatpush1.bf16.msra.mxu1 %v1952_v32  ;;  %578 = vmatprep.subr.bf16.mxu0 %v2031_v1  ;;  %v2359_v32 = vld [vmem:[%s2250_s26 + $0x10] sm:$0xff] }
  0x31   : > { %716 = vmatprep.subr.bf16.mxu1 %v2031_v1 }
  0x33   : > { %579 = vmatpush1.bf16.msra.mxu0 %v1953_v33  ;;  %v1976_v33 = vld [vmem:[%s2636_s3 + $0xa4] sm:$0xff]  }
  0x34   : > { %717 = vmatpush1.bf16.msra.mxu1 %v1954_v34  ;;  %580 = vmatprep.subr.bf16.mxu0 %v2031_v1  ;;  %v935_v34 = vunpack.c.l.bf16 %v2359_v32 }
  0x35   : > { %718 = vmatprep.subr.bf16.mxu1 %v2031_v1 }
  0x36   : > { %v949_v40 = vrot.slane %v935_v34, 7 }
  0x37   : > { %581 = vmatpush1.bf16.msra.mxu0 %v1955_v38  ;;  %v1977_v38 = vld [vmem:[%s2635_s2 + $0x118] sm:$0xff]  }
  0x38   : > { %719 = vmatpush1.bf16.msra.mxu1 %v1956_v39  ;;  %582 = vmatprep.subr.bf16.mxu0 %v2031_v1  ;;  %v2376_v39 = vrot.slane %v935_v34, 1  ;;  %v2396_v47 = vsel %vm348_vm1, %v2293_v7, %v949_v40  ;;  %v936_v7 = vunpack.c.h.bf16 %v2359_v32  ;;  %v2001_v34 = vld [vmem:[%s2636_s3 + $0x20] sm:$0xff]   ;;  %v2003_v40 = vld [vmem:[%s2636_s3 + $0x28] sm:$0xff]  }
  0x39   : > { %720 = vmatprep.subr.bf16.mxu1 %v2031_v1 }
  0x3a   : > { %v2386_v43 = vsel %vm371_vm6, %v966_v23, %v2376_v39  ;;  %v1997_v23 = vld [vmem:[%s2636_s3 + $0x10] sm:$0xff]  }
  0x3b   : > { %583 = vmatpush1.bf16.msra.mxu0 %v554_v46  ;;  %v983_v44 = vpack.c.bf16 %v2386_v43, %v2329_v24  ;;  %v1979_v46 = vld [vmem:[%s2635_s2 + $0x120] sm:$0xff]  }
  0x3c   : > { %721 = vmatpush1.bf16.msra.mxu1 %v692_v49  ;;  %860 = vmatprep.subr.bf16.mxu0 %v2031_v1  ;;  %v1980_v49 = vld [vmem:[%s2636_s3 + $0xb4] sm:$0xff]  }
  0x3d   : > { %1147 = vmatprep.subr.bf16.mxu1 %v2031_v1 }
  0x3e   : > { %589 = vmatmul.mubr.bf16.vlgmr.msra.gmra.mrb[0].mxu0 %v1697_v50  ;;  %v1981_v50 = vld [vmem:[%s2635_s2 + $0x128] sm:$0xff]  }
  0x3f   : > { %1735 = vmatmul.mubr.msk.bf16.vlgmr.msra.gmra.mrb[0].mxu1 %vm2242_vm5, %v1734_v52  ;;  %861 = vmatpush1.bf16.msra.mxu0 %v1961_v53  ;;  %v1982_v52 = vld [vmem:[%s2636_s3 + $0xbc] sm:$0xff]   ;;  %v1984_v53 = vld [vmem:[%s2635_s2 + $0x130] sm:$0xff]  }
  0x40   : > { %1148 = vmatpush1.bf16.msra.mxu1 %v1962_v55  ;;  %862 = vmatprep.subr.bf16.mxu0 %v2031_v1  ;;  %v372_v55 = vrot.slane %v336_v36, 1 }
  0x41   : > { %1149 = vmatprep.subr.bf16.mxu1 %v2031_v1  ;;  %1716 = vmatprep.mubr.msk.bf16.mxu0 %vm545_vm0, %v1700_v57  ;;  %v378_v57 = vrot.slane %v340_v48, 1  ;;  %v1145_v48 = vsel %vm552_vm2, %v1990_v18, 0  ;;  %v2020_v18 = vld [vmem:[%s2636_s3 + $0x138] sm:$0xff]  }
  0x42   : > { %1736 = vmatprep.mubr.msk.bf16.mxu1 %vm545_vm0, %v370_v60  ;;  %v374_v35 = vsel %vm371_vm6, %v372_v55, %v373_v56  ;;  %v2012_v55 = vld [vmem:[%s2636_s3 + $0x120] sm:$0xff]  }
  0x43   : > { %863 = vmatpush1.bf16.msra.mxu0 %v1963_v0  ;;  %v379_v36 = vsel %vm371_vm6, %v373_v56, %v378_v57  ;;  %v389_v0 = vsel %vm371_vm6, %v2269_v61, 0.0  ;;  %v1994_v61 = vld [vmem:[%s2636_s3 + $0xd8] sm:$0xff]   ;;  %v2013_v56 = vld [vmem:[%s2636_s3 + $0x50] sm:$0xff]  }
  0x44   : > { %1150 = vmatpush1.bf16.msra.mxu1 %v1964_v4  ;;  %864 = vmatprep.subr.bf16.mxu0 %v2031_v1  ;;  %v390_v60 = vpack.c.bf16 %v379_v36, %v374_v35  ;;  %v1814_v4 = vcombine.low %v2272_v62, %v2275_v63  ;;  %v1817_v62 = vcombine.high %v2359_v32, %v2359_v32  ;;  %v944_v63 = vrot.slane %v932_v2, 7  ;;  %v2021_v35 = vld [vmem:[%s2636_s3 + $0x68] ss:$0 sps:$4 sm:$0xff]  }
  0x45   : > { %1151 = vmatprep.subr.bf16.mxu1 %v2031_v1  ;;  %v951_v36 = vrot.slane %v936_v7, 7 }
  0x46   : > { %597 = vmatmul.mubr.bf16.gmra.mrb[4].mxu0 %v1699_v8  ;;  %v393_v8 = vpack.c.bf16 %v389_v0, %v389_v0  ;;  %v960_v21 = vsel %vm348_vm1, 0.0, %v944_v63 }
  0x47   : > { %865 = vmatpush1.bf16.msra.mxu0 %v1965_v11  ;;  %735 = vmatmul.mubr.bf16.gmra.mrb[4].mxu1 %v369_v12  ;;  %v968_v11 = vrot.slane %v932_v2, 1  ;;  %v969_v12 = vrot.slane %v934_v3, 1 }
  0x48   : > { %1152 = vmatpush1.bf16.msra.mxu1 %v1966_v14  ;;  %866 = vmatprep.subr.bf16.mxu0 %v2031_v1  ;;  %v2469_v14 = vrot.slane %v936_v7, 1 }
  0x49   : > { %1153 = vmatprep.subr.bf16.mxu1 %v2031_v1  ;;  %1778 = vmatprep.mubr.msk.bf16.mxu0 %vm545_vm0, %v391_v16  ;;  %v1996_v16 = vld [vmem:[%s2636_s3 + $0xe0] sm:$0xff]  }
  0x4a   : > { %1832 = vmatprep.mubr.msk.bf16.mxu1 %vm545_vm0, %v1815_v19  ;;  %v1781_v19 = vpack.c.bf16 %v378_v57, %v378_v57  ;;  %v2014_v57 = vld [vmem:[%s2636_s3 + $0x128] sm:$0xff]   ;;  %v982_v0 = vsel %vm371_vm6, %v2469_v14, 0.0 }
  0x4b   : > { %867 = vmatpush1.bf16.msra.mxu0 %v1967_v20  ;;  %v948_v20 = vsel %vm348_vm1, %v944_v63, %v2462_v9  ;;  %v986_v3 = vpack.c.bf16 %v982_v0, %v982_v0 }
  0x4c   : > { %1154 = vmatpush1.bf16.msra.mxu1 %v1968_v22  ;;  %868 = vmatprep.subr.bf16.mxu0 %v2031_v1 }
  0x4d   : > { %1155 = vmatprep.subr.bf16.mxu1 %v2031_v1 }
  0x4f   : > { %869 = vmatpush1.bf16.msra.mxu0 %v1969_v25  ;;  %v1816_v25 = vcombine.low %v2359_v32, %v2359_v32 }
  0x50   : > { %1156 = vmatpush1.bf16.msra.mxu1 %v1970_v26  ;;  %870 = vmatprep.subr.bf16.mxu0 %v2031_v1  ;;  %v970_v26 = vsel %vm371_vm6, %v968_v11, %v969_v12 }
  0x51   : > { %1157 = vmatprep.subr.bf16.mxu1 %v2031_v1 }
  0x53   : > { %871 = vmatpush1.bf16.msra.mxu0 %v1971_v27  ;;  %v974_v27 = vsel %vm371_vm6, %v969_v12, %v2469_v14 }
  0x54   : > { %1158 = vmatpush1.bf16.msra.mxu1 %v1972_v28  ;;  %872 = vmatprep.subr.bf16.mxu0 %v2031_v1  ;;  %v1998_v28 = vld [vmem:[%s2636_s3 + $0xe8] sm:$0xff]  }
  0x55   : > { %1159 = vmatprep.subr.bf16.mxu1 %v2031_v1 }
  0x57   : > { %873 = vmatpush1.bf16.msra.mxu0 %v1973_v29  ;;  %v962_v29 = vpack.c.bf16 %v948_v20, %v960_v21 }
  0x58   : > { %1160 = vmatpush1.bf16.msra.mxu1 %v1974_v30  ;;  %874 = vmatprep.subr.bf16.mxu0 %v2031_v1  ;;  %v984_v30 = vpack.c.bf16 %v974_v27, %v970_v26 }
  0x59   : > { %1161 = vmatprep.subr.bf16.mxu1 %v2031_v1 }
  0x5b   : > { %875 = vmatpush1.bf16.msra.mxu0 %v1975_v31  ;;  %v1999_v31 = vld [vmem:[%s2636_s3 + $0x18] sm:$0xff]  }
  0x5c   : > { %1162 = vmatpush1.bf16.msra.mxu1 %v1976_v33  ;;  %876 = vmatprep.subr.bf16.mxu0 %v2031_v1  ;;  %v2000_v33 = vld [vmem:[%s2636_s3 + $0xf0] sm:$0xff]  }
  0x5d   : > { %1163 = vmatprep.subr.bf16.mxu1 %v2031_v1 }
  0x5f   : > { %877 = vmatpush1.bf16.msra.mxu0 %v1977_v38  ;;  %v2002_v38 = vld [vmem:[%s2636_s3 + $0xf8] sm:$0xff]  }
  0x60   : > { %1164 = vmatpush1.bf16.msra.mxu1 %v1978_v42  ;;  %878 = vmatprep.subr.bf16.mxu0 %v2031_v1  ;;  %v2005_v42 = vld [vmem:[%s2636_s3 + $0x30] sm:$0xff]  }
  0x61   : > { %1165 = vmatprep.subr.bf16.mxu1 %v2031_v1 }
  0x63   : > { %879 = vmatpush1.bf16.msra.mxu0 %v1979_v46  ;;  %v2007_v46 = vld [vmem:[%s2636_s3 + $0x38] sm:$0xff]  }
  0x64   : > { %1166 = vmatpush1.bf16.msra.mxu1 %v1980_v49  ;;  %880 = vmatprep.subr.bf16.mxu0 %v2031_v1  ;;  %v2008_v49 = vld [vmem:[%s2636_s3 + $0x110] sm:$0xff]  }
  0x65   : > { %1167 = vmatprep.subr.bf16.mxu1 %v2031_v1 }
  0x67   : > { %881 = vmatpush1.bf16.msra.mxu0 %v1981_v50  ;;  %v2009_v50 = vld [vmem:[%s2636_s3 + $0x40] sm:$0xff]  }
  0x68   : > { %1168 = vmatpush1.bf16.msra.mxu1 %v1982_v52  ;;  %882 = vmatprep.subr.bf16.mxu0 %v2031_v1  ;;  %v2010_v52 = vld [vmem:[%s2636_s3 + $0x118] sm:$0xff]  }
  0x69   : > { %1169 = vmatprep.subr.bf16.mxu1 %v2031_v1 }
  0x6b   : > { %883 = vmatpush1.bf16.msra.mxu0 %v1984_v53  ;;  %v1533_v53 = vld [vmem:[%s2370_s13 + $0x10] sm:$0xff] }
  0x6c   : > { %1170 = vmatpush1.bf16.msra.mxu1 %v1985_v54  ;;  %884 = vmatprep.subr.bf16.mxu0 %v2031_v1  ;;  %v2011_v54 = vld [vmem:[%s2636_s3 + $0x48] sm:$0xff]  }
  0x6d   : > { %1171 = vmatprep.subr.bf16.mxu1 %v2031_v1  ;;  %1546 = vperm.xlu1 %1930, %v1533_v53   ;;  %v1900_v53 = vld [vmem:[%s2637_s4 + $0x1] ss:$0 sm:$0xff] }
  0x6f   : > { %885 = vmatpush1.bf16.msra.mxu0 %v1987_v58  ;;  %v2015_v58 = vld [vmem:[%s2636_s3 + $0x58] sm:$0xff]  }
  0x70   : > { %1172 = vmatpush1.bf16.msra.mxu1 %v1988_v59  ;;  %886 = vmatprep.subr.bf16.mxu0 %v2031_v1  ;;  %v2016_v59 = vld [vmem:[%s2636_s3 + $0x130] sm:$0xff]  }
  0x71   : > { %1173 = vmatprep.subr.bf16.mxu1 %v2031_v1 }
  0x73   : > { %887 = vmatpush1.bf16.msra.mxu0 %v858_v37  ;;  %v2022_v37 = vld [vmem:[%s2636_s3 + $0x140] ss:$0 sps:$4 sm:$0xff]  }
  0x74   : > { %1174 = vmatpush1.bf16.msra.mxu1 %v1145_v48  ;;  %1285 = vmatprep.subr.bf16.mxu0 %v2031_v1  ;;  %v1283_v48 = vsel %vm552_vm2, %v2021_v35, 0  ;;  %v1449_v32 = vsel %vm552_vm2, %v2022_v37, 0 }
  0x75   : > { %1451 = vmatprep.subr.bf16.mxu1 %v2031_v1 }
  0x76   : > { %893 = vmatmul.mubr.bf16.vlgmr.msra.gmra.mrb[8].mxu0 %v390_v60  ;;  %v952_v60 = vsel %vm348_vm1, %v2462_v9, %v951_v36 }
  0x77   : > { %1180 = vmatmul.mubr.bf16.vlgmr.msra.gmra.mrb[8].mxu1 %v1814_v4  ;;  %1286 = vmatpush1.bf16.msra.mxu0 %v1993_v5  ;;  %v964_v2 = vpack.c.bf16 %v952_v60, %v952_v60  ;;  %v1898_v4 = vpack.c.bf16 %v2376_v39, %v2376_v39 }
  0x78   : > { %1452 = vmatpush1.bf16.msra.mxu1 %v1994_v61  ;;  %1287 = vmatprep.subr.bf16.mxu0 %v2031_v1 }
  0x79   : > { %1453 = vmatprep.subr.bf16.mxu1 %v2031_v1  ;;  %1779 = vmatprep.mubr.msk.bf16.mxu0 %vm545_vm0, %v393_v8 }
  0x7a   : > { %1833 = vmatprep.mubr.msk.bf16.mxu1 %vm545_vm0, %v1817_v62 }
  0x7b   : > { %1288 = vmatpush1.bf16.msra.mxu0 %v1995_v10 }
  0x7c   : > { %1454 = vmatpush1.bf16.msra.mxu1 %v1996_v16  ;;  %1289 = vmatprep.subr.bf16.mxu0 %v2031_v1 }
  0x7d   : > { %1455 = vmatprep.subr.bf16.mxu1 %v2031_v1 }
  0x7e   : > { %1782 = vmatmul.mubr.msk.bf16.gmra.mrb[12].mxu0 %vm2483_vm7, %v1781_v19 }
  0x7f   : > { %1290 = vmatpush1.bf16.msra.mxu0 %v1997_v23  ;;  %1188 = vmatmul.mubr.bf16.gmra.mrb[12].mxu1 %v1816_v25 }
  0x80   : > { %1456 = vmatpush1.bf16.msra.mxu1 %v1998_v28  ;;  %1291 = vmatprep.subr.bf16.mxu0 %v2031_v1 }
  0x81   : > { %1457 = vmatprep.subr.bf16.mxu1 %v2031_v1  ;;  %1848 = vmatprep.mubr.msk.bf16.mxu0 %vm545_vm0, %v962_v29 }
  0x82   : > { %1895 = vmatprep.mubr.msk.bf16.mxu1 %vm545_vm0, %v984_v30 }
  0x83   : > { %1292 = vmatpush1.bf16.msra.mxu0 %v1999_v31 }
  0x84   : > { %1458 = vmatpush1.bf16.msra.mxu1 %v2000_v33  ;;  %1293 = vmatprep.subr.bf16.mxu0 %v2031_v1 }
  0x85   : > { %1459 = vmatprep.subr.bf16.mxu1 %v2031_v1 }
  0x87   : > { %1294 = vmatpush1.bf16.msra.mxu0 %v2001_v34 }
  0x88   : > { %1460 = vmatpush1.bf16.msra.mxu1 %v2002_v38  ;;  %1295 = vmatprep.subr.bf16.mxu0 %v2031_v1 }
  0x89   : > { %1461 = vmatprep.subr.bf16.mxu1 %v2031_v1 }
  0x8b   : > { %1296 = vmatpush1.bf16.msra.mxu0 %v2003_v40 }
  0x8c   : > { %1462 = vmatpush1.bf16.msra.mxu1 %v2004_v41  ;;  %1297 = vmatprep.subr.bf16.mxu0 %v2031_v1 }
  0x8d   : > { %1463 = vmatprep.subr.bf16.mxu1 %v2031_v1 }
  0x8f   : > { %1298 = vmatpush1.bf16.msra.mxu0 %v2005_v42  ;;  %v1783_v42 = vld [vmem:[%s2637_s4] ss:$0 sm:$0xff] }
  0x90   : > { %1464 = vmatpush1.bf16.msra.mxu1 %v2006_v45  ;;  %1299 = vmatprep.subr.bf16.mxu0 %v2031_v1 }
  0x91   : > { %1465 = vmatprep.subr.bf16.mxu1 %v2031_v1 }
  0x93   : > { %1300 = vmatpush1.bf16.msra.mxu0 %v2007_v46 }
  0x94   : > { %1466 = vmatpush1.bf16.msra.mxu1 %v2008_v49  ;;  %1301 = vmatprep.subr.bf16.mxu0 %v2031_v1 }
  0x95   : > { %1467 = vmatprep.subr.bf16.mxu1 %v2031_v1  ;;  %v1537_v37 = vpop.permute.xlu0 %1536 }
  0x97   : > { %1302 = vmatpush1.bf16.msra.mxu0 %v2009_v50 }
  0x98   : > { %1468 = vmatpush1.bf16.msra.mxu1 %v2010_v52  ;;  %1303 = vmatprep.subr.bf16.mxu0 %v2031_v1 }
  0x99   : > { %1469 = vmatprep.subr.bf16.mxu1 %v2031_v1 }
  0x9b   : > { %1304 = vmatpush1.bf16.msra.mxu0 %v2011_v54 }
  0x9c   : > { %1470 = vmatpush1.bf16.msra.mxu1 %v2012_v55  ;;  %1305 = vmatprep.subr.bf16.mxu0 %v2031_v1 }
  0x9d   : > { %1471 = vmatprep.subr.bf16.mxu1 %v2031_v1 }
  0x9f   : > { %1306 = vmatpush1.bf16.msra.mxu0 %v2013_v56 }
  0xa0   : > { %1472 = vmatpush1.bf16.msra.mxu1 %v2014_v57  ;;  %1307 = vmatprep.subr.bf16.mxu0 %v2031_v1 }
  0xa1   : > { %1473 = vmatprep.subr.bf16.mxu1 %v2031_v1 }
  0xa3   : > { %1308 = vmatpush1.bf16.msra.mxu0 %v2015_v58 }
  0xa4   : > { %1474 = vmatpush1.bf16.msra.mxu1 %v2016_v59  ;;  %1309 = vmatprep.subr.bf16.mxu0 %v2031_v1 }
  0xa5   : > { %1475 = vmatprep.subr.bf16.mxu1 %v2031_v1 }
  0xa7   : > { %1310 = vmatpush1.bf16.msra.mxu0 %v2019_v17 }
  0xa8   : > { %1476 = vmatpush1.bf16.msra.mxu1 %v2020_v18  ;;  %1311 = vmatprep.subr.bf16.mxu0 %v2031_v1 }
  0xa9   : > { %1477 = vmatprep.subr.bf16.mxu1 %v2031_v1  ;;  %v963_v1 = vpack.c.bf16 %v2396_v47, %v2396_v47 }
  0xab   : > { %1312 = vmatpush1.bf16.msra.mxu0 %v1283_v48 }
  0xac   : > { %1478 = vmatpush1.bf16.msra.mxu1 %v1449_v32  ;;  %v2033_v32 = vmov 0.0  }
  0xae   : > { %1852 = vmatmul.mubr.msk.bf16.vlgmr.msra.gmra.mrb[16].mxu0 %vm2242_vm5, %v1851_v15 }
  0xaf   : > { %1484 = vmatmul.mubr.bf16.vlgmr.msra.gmra.mrb[16].mxu1 %v983_v44  ;;  %1853 = vmatprep.mubr.msk.bf16.mxu0 %vm545_vm0, %v964_v2 }
  0xb0   : > { %1896 = vmatprep.mubr.msk.bf16.mxu1 %vm545_vm0, %v986_v3  ;;  %vm1575_vm0 = vcmask 584704  }
  0xb6   : > { %1326 = vmatmul.mubr.bf16.gmra.mrb[20].mxu0 %v963_v1 }
  0xb7   : > { %1899 = vmatmul.mubr.msk.bf16.gmra.mrb[20].mxu1 %vm2483_vm7, %v1898_v4 }
 0x111   : > { %v590_v51 = vpop.f32.mrb[0].mxu0 }
 0x112   : > { %v728_v6 = vpop.f32.mrb[0].mxu1  ;;  %v592_v13 = vpop.f32.mrb[1].mxu0 }
 0x113   : > { %v729_v15 = vadd.f32 %v728_v6, %v590_v51  ;;  %v730_v24 = vpop.f32.mrb[1].mxu1  ;;  %v593_v43 = vpop.f32.mrb[2].mxu0 }
 0x114   : > { %v731_v44 = vpop.f32.mrb[2].mxu1  ;;  %v595_v5 = vpop.f32.mrb[3].mxu0 }
 0x115   : > { %v732_v7 = vadd.f32 %v731_v44, %v593_v43  ;;  %v733_v61 = vpop.f32.mrb[3].mxu1 }
 0x119   : > { %v598_v8 = vpop.f32.mrb[4].mxu0 }
 0x11a   : > { %v600_v62 = vpop.f32.mrb[5].mxu0  ;;  %v736_v47 = vpop.f32.mrb[4].mxu1 }
 0x11b   : > { %v601_v63 = vpop.f32.mrb[6].mxu0  ;;  %v737_v9 = vadd.f32 %v736_v47, %v598_v8  ;;  %v738_v39 = vpop.f32.mrb[5].mxu1  ;;  %v1907_v8 = vld [vmem:[%s2639_s6] ss:$0 sm:$0xff] }
 0x11c   : > { %v602_v10 = vpop.f32.mrb[7].mxu0  ;;  %v739_v11 = vpop.f32.mrb[6].mxu1 }
 0x11d   : > { %v740_v12 = vpop.f32.mrb[7].mxu1  ;;  %v1542_v63 = vpop.permute.xlu0 %1541 }
 0x149   : > { %v894_v14 = vpop.f32.mrb[8].mxu0 }
 0x14a   : > { %v908_v16 = vadd.f32 %v894_v14, %v729_v15  ;;  %v1181_v19 = vpop.f32.mrb[8].mxu1  ;;  %v896_v20 = vpop.f32.mrb[9].mxu0 }
 0x14b   : > { %v1183_v21 = vpop.f32.mrb[9].mxu1  ;;  %v897_v22 = vpop.f32.mrb[10].mxu0 }
 0x14c   : > { %v909_v23 = vadd.f32 %v897_v22, %v732_v7  ;;  %v1184_v25 = vpop.f32.mrb[10].mxu1  ;;  %v899_v26 = vpop.f32.mrb[11].mxu0  ;;  %v916_v46 = vadd.f32 %v1783_v42, %v908_v16 }
 0x14d   : > { %v1186_v27 = vpop.f32.mrb[11].mxu1  ;;  %v1547_v22 = vpop.permute.xlu1 %1546 }
 0x14e   : > { %v917_v56 = vadd.f32 %v1783_v42, %v909_v23  ;;  %vm919_vm8 = vcmp.ge.f32.partialorder %v916_v46, 0.25 }
 0x14f   : > { %v1784_v0 = vsel %vm919_vm8, 1.0, %v2033_v32 }
 0x150   : > { %vm920_vm9 = vcmp.ge.f32.partialorder %v917_v56, 0.25 }
 0x151   : > { %v902_v28 = vpop.f32.mrb[12].mxu0  ;;  %v1785_v24 = vsel %vm920_vm9, 1.0, %v2033_v32 }
 0x152   : > { %v910_v29 = vadd.f32 %v902_v28, %v737_v9  ;;  %v904_v30 = vpop.f32.mrb[13].mxu0  ;;  %v1189_v31 = vpop.f32.mrb[12].mxu1 }
 0x153   : > { %v905_v33 = vpop.f32.mrb[14].mxu0  ;;  %v1191_v34 = vpop.f32.mrb[13].mxu1 }
 0x154   : > { %v906_v38 = vpop.f32.mrb[15].mxu0  ;;  %v1192_v40 = vpop.f32.mrb[14].mxu1  ;;  %v918_v3 = vadd.f32 %v1783_v42, %v910_v29 }
 0x155   : > { %v1193_v41 = vpop.f32.mrb[15].mxu1 }
 0x156   : > { %vm921_vm13 = vcmp.ge.f32.partialorder %v918_v3, 0.25 }
 0x157   : > { %v1786_v14 = vsel %vm921_vm13, 1.0, %v2033_v32 }
 0x181   : > { %v1319_v45 = vpop.f32.mrb[16].mxu0 }
 0x182   : > { %v1320_v49 = vadd.f32 %v1319_v45, %v1181_v19  ;;  %v1485_v50 = vpop.f32.mrb[16].mxu1  ;;  %v1321_v52 = vpop.f32.mrb[17].mxu0 }
 0x183   : > { %v1487_v54 = vpop.f32.mrb[17].mxu1  ;;  %v1322_v55 = vpop.f32.mrb[18].mxu0 }
 0x184   : > { %v1499_v57 = vadd.f32 %v1485_v50, %v1320_v49  ;;  %v1323_v58 = vadd.f32 %v1322_v55, %v1184_v25  ;;  %v1488_v59 = vpop.f32.mrb[18].mxu1  ;;  %v1324_v17 = vpop.f32.mrb[19].mxu0 }
 0x185   : > { %v1490_v18 = vpop.f32.mrb[19].mxu1 }
 0x186   : > { %v1507_v35 = vadd.f32 %v1900_v53, %v1499_v57  ;;  %v1500_v36 = vadd.f32 %v1488_v59, %v1323_v58 }
 0x188   : > { %vm1510_vm10 = vcmp.ge.f32.partialorder %v1507_v35, 0.25  ;;  %v1508_v48 = vadd.f32 %v1900_v53, %v1500_v36 }
 0x189   : > { %v1327_v60 = vpop.f32.mrb[20].mxu0  ;;  %v1901_v2 = vsel %vm1510_vm10, 1.0, %v2033_v32 }
 0x18a   : > { %vm1511_vm11 = vcmp.ge.f32.partialorder %v1508_v48, 0.25  ;;  %v1328_v1 = vadd.f32 %v1327_v60, %v1189_v31  ;;  %v1493_v4 = vpop.f32.mrb[20].mxu1  ;;  %v1329_v51 = vpop.f32.mrb[21].mxu0  ;;  %v1519_v6 = vadd.f32 %v1901_v2, %v1784_v0 }
 0x18b   : > { %v1495_v13 = vpop.f32.mrb[21].mxu1  ;;  %v1330_v15 = vpop.f32.mrb[22].mxu0  ;;  %v1902_v43 = vsel %vm1511_vm11, 1.0, %v2033_v32 }
 0x18c   : > { %v1501_v44 = vadd.f32 %v1493_v4, %v1328_v1  ;;  %vm1522_vm12 = vcmp.ge.f32.partialorder %v1519_v6, 0.25  ;;  %v1496_v5 = vpop.f32.mrb[22].mxu1  ;;  %v1331_v7 = vpop.f32.mrb[23].mxu0  ;;  %v1520_v61 = vadd.f32 %v1902_v43, %v1785_v24 }
 0x18d   : > { %v1904_v62 = vsel %vm1522_vm12, 1.0, %v2033_v32  ;;  %v1497_v47 = vpop.f32.mrb[23].mxu1 }
 0x18e   : > { %v1509_v9 = vadd.f32 %v1900_v53, %v1501_v44  ;;  %v1549_v39 = vmul.f32 %v1904_v62, %v1537_v37  ;;  %vm1523_vm14 = vcmp.ge.f32.partialorder %v1520_v61, 0.25 }
 0x18f   : > { %v1905_v10 = vsel %vm1523_vm14, 1.0, %v2033_v32 }
 0x190   : > { %vm1512_vm15 = vcmp.ge.f32.partialorder %v1509_v9, 0.25  ;;  %v1559_v11 = vmul.f32 %v1907_v8, %v1549_v39  ;;  %v1550_v12 = vmul.f32 %v1905_v10, %v1542_v63 }
 0x191   : > { %v1903_v16 = vsel %vm1512_vm15, 1.0, %v2033_v32 }
 0x192   : > { %v1915_v19 = vpack.c.bf16 %v1559_v11, %v1559_v11  ;;  %v1560_v20 = vmul.f32 %v1907_v8, %v1550_v12  ;;  %v1521_v21 = vadd.f32 %v1903_v16, %v1786_v14 }
 0x194   : > { %1576 = vst.msk [vmem:[%s330_s30] sm:$0xf] %vm1575_vm0, %v1915_v19  ;;  %v1916_v23 = vpack.c.bf16 %v1560_v20, %v1560_v20  ;;  %vm1524_vm1 = vcmp.ge.f32.partialorder %v1521_v21, 0.25 }
 0x195   : > { %v1906_v25 = vsel %vm1524_vm1, 1.0, %v2033_v32 }
 0x196   : > { %1577 = vst.msk [vmem:[%s330_s30 + $0x4] sm:$0xf] %vm1575_vm0, %v1916_v23  ;;  %v1551_v26 = vmul.f32 %v1906_v25, %v1547_v22 }
 0x198   : > { %v1561_v27 = vmul.f32 %v1907_v8, %v1551_v26 }
 0x19a   : > { %v1917_v28 = vpack.c.bf16 %v1561_v27, %v1561_v27 }
 0x19c   : > { %1578 = vst.msk [vmem:[%s330_s30 + $0x8] sm:$0xf] %vm1575_vm0, %v1917_v28 }
 0x19d PF: > { %s17_s24 = sadd.s32 1, %s2029_s24  }
 0x19e   : > { %p14_p4 = scmp.ge.s32.totalorder %s17_s24, 6  }
 0x1a0   :  { %16 = sbr.rel (!%p14_p4) target bundleno = 1 (0x1), region = 88 }

</bundles_post_ra>
